<compile_context>
chip_gen: v7x
topology: tpu7x:2x2x1
jax: 0.10.0
libtpu: 0.0.40
codegen_flags: <defaults>
</compile_context>

<pallas_src>
import functools

import jax
import jax.numpy as jnp
from jax.experimental import pallas as pl
from jax.experimental.pallas import tpu as pltpu

EPS = 1e-5
_VMEM_LIMIT_BYTES = 32 * 1024 * 1024  # safe on v5e/v6e/v7x; tiles are small


def _compiler_params():
    return pltpu.CompilerParams(
        dimension_semantics=("parallel",),
        vmem_limit_bytes=_VMEM_LIMIT_BYTES)


def _stats_rows(y, c):
    """(rows, C) f32 -> (8, C) tile: row0 = sum, row1 = sumsq, rest zero."""
    s = jnp.sum(y, axis=0, keepdims=True)
    ss = jnp.sum(y * y, axis=0, keepdims=True)
    return jnp.concatenate([s, ss, jnp.zeros((6, c), jnp.float32)], axis=0)


# ------------------------------ pass 1 kernel ------------------------------ #
def _conv1_kernel(xs_ref, w_ref, y1_ref, *rest, cmid, has_down):
    if has_down:
        yd_ref, st1_ref, std_ref = rest
    else:
        (st1_ref,) = rest
    x = xs_ref[...]                                           # (TM, Cin) f32
    y = jnp.dot(x.astype(jnp.bfloat16), w_ref[...],
                preferred_element_type=jnp.float32)           # (TM, Cmid[+Cout])
    y1 = y[:, :cmid]
    y1_ref[...] = y1
    st1_ref[...] = _stats_rows(y1, cmid)[None]
    if has_down:
        yd = y[:, cmid:]
        yd_ref[...] = yd
        std_ref[...] = _stats_rows(yd, yd.shape[1])[None]


# ------------------------------ pass 2 kernel ------------------------------ #
def _conv2_kernel(y1_ref, bn1_ref, w2_ref, y2_ref, st2_ref,
                  hpad_ref, patch_ref, *, ho, wo, cmid):
    # BN1-apply (fused scale/shift) + ReLU; single cast to bf16 for the MXU.
    h1 = jnp.maximum(y1_ref[0] * bn1_ref[0:1, :] + bn1_ref[1:2, :], 0.0
                     ).astype(jnp.bfloat16)                    # (Ho, Wo, Cmid)

    # Zero only the 1-wide halo border of the bf16 scratch; interior is
    # overwritten every step (no full-scratch zero fill).
    hpad_ref[0:1, :, :] = jnp.zeros((1, wo + 2, cmid), jnp.bfloat16)
    hpad_ref[ho + 1:ho + 2, :, :] = jnp.zeros((1, wo + 2, cmid), jnp.bfloat16)
    hpad_ref[:, 0:1, :] = jnp.zeros((ho + 2, 1, cmid), jnp.bfloat16)
    hpad_ref[:, wo + 1:wo + 2, :] = jnp.zeros((ho + 2, 1, cmid), jnp.bfloat16)
    hpad_ref[1:ho + 1, 1:wo + 1, :] = h1

    # In-VMEM im2col: 9 shifted copies into one (Ho, Wo, 9*Cmid) bf16 slab,
    # then a single deep-K matmul (instead of 9 K=Cmid matmuls).
    for k in range(9):
        dh, dw = divmod(k, 3)
        patch_ref[:, :, k * cmid:(k + 1) * cmid] = \
            hpad_ref[dh:dh + ho, dw:dw + wo, :]

    p = patch_ref[...].reshape(ho * wo, 9 * cmid)
    y2 = jnp.dot(p, w2_ref[...], preferred_element_type=jnp.float32)

    st2_ref[...] = _stats_rows(y2, cmid)[None]
    y2_ref[...] = y2.reshape(1, ho, wo, cmid)


# ------------------------------ pass 3 kernel ------------------------------ #
def _conv3_kernel(y2_ref, bn2_ref, w3_ref, y3_ref, st3_ref, *, cout):
    h2 = jnp.maximum(y2_ref[...] * bn2_ref[0:1, :] + bn2_ref[1:2, :], 0.0)
    y3 = jnp.dot(h2.astype(jnp.bfloat16), w3_ref[...],
                 preferred_element_type=jnp.float32)
    y3_ref[...] = y3
    st3_ref[...] = _stats_rows(y3, cout)[None]


# ------------------------------ pass 4 kernel ------------------------------ #
def _epilogue_kernel(y3_ref, res_ref, bn3_ref, *rest, has_down):
    if has_down:
        bnd_ref, o_ref = rest
        res = res_ref[...] * bnd_ref[0:1, :] + bnd_ref[1:2, :]
    else:
        (o_ref,) = rest
        res = res_ref[...]                       # identity shortcut, f32 input
    out = y3_ref[...] * bn3_ref[0:1, :] + bn3_ref[1:2, :]
    o_ref[...] = jnp.maximum(out + res, 0.0)


# -------------------------------- wrapper ---------------------------------- #
def _pick_row_tile(m, target):
    """Largest divisor of m that is a multiple of 8 and <= target (else m)."""
    for t in range(min(m, target), 7, -1):
        if m % t == 0 and t % 8 == 0:
            return t
    return m


def bottleneck_forward(x_nhwc, params, stride, *, row_tile=512):
    N, H, W, Cin = x_nhwc.shape
    Cmid = params["w1"].shape[1]
    Cout = params["w3"].shape[1]
    has_down = (stride != 1) or (Cin != Cout)

    xs = x_nhwc[:, ::stride, ::stride, :] if stride != 1 else x_nhwc
    Ho, Wo = xs.shape[1], xs.shape[2]
    M = N * Ho * Wo
    TM = _pick_row_tile(M, row_tile)
    n_tiles = M // TM
    inv_m = 1.0 / M

    f32, bf16 = jnp.float32, jnp.bfloat16
    xs2d = xs.reshape(M, Cin)                     # f32, no padding / no cast

    # --- weights: bf16 MXU operands; conv1 & downsample fused column-wise ---
    w1 = params["w1"].astype(bf16)                               # (Cin, Cmid)
    w1c = (jnp.concatenate([w1, params["wd"].astype(bf16)], axis=1)
           if has_down else w1)
    w2m = params["w2_oihw"].transpose(2, 3, 1, 0).reshape(
        9 * Cmid, Cmid).astype(bf16)                             # im2col layout
    w3 = params["w3"].astype(bf16)                               # (Cmid, Cout)

    def bn_scale_shift(stats, g, b):
        # stats: (tiles, 8, C) partials: row0 = sum, row1 = sumsq.
        s = jnp.sum(stats[:, 0, :], axis=0)
        ss = jnp.sum(stats[:, 1, :], axis=0)
        mean = s * inv_m
        var = jnp.maximum(ss * inv_m - mean * mean, 0.0)  # clamp: cancellation
        scale = g * jax.lax.rsqrt(var + EPS)
        shift = b - mean * scale
        return jnp.stack([scale, shift]).astype(f32)             # (2, C)

    cp = _compiler_params()

    # ---- pass 1: conv1 (+ downsample conv) + BN1/BNd stat partials ----------
    out_shapes1 = [jax.ShapeDtypeStruct((M, Cmid), f32)]
    out_specs1 = [pl.BlockSpec((TM, Cmid), lambda i: (i, 0))]
    if has_down:
        out_shapes1.append(jax.ShapeDtypeStruct((M, Cout), f32))
        out_specs1.append(pl.BlockSpec((TM, Cout), lambda i: (i, 0)))
    out_shapes1.append(jax.ShapeDtypeStruct((n_tiles, 8, Cmid), f32))
    out_specs1.append(pl.BlockSpec((1, 8, Cmid), lambda i: (i, 0, 0)))
    if has_down:
        out_shapes1.append(jax.ShapeDtypeStruct((n_tiles, 8, Cout), f32))
        out_specs1.append(pl.BlockSpec((1, 8, Cout), lambda i: (i, 0, 0)))

    res1 = pl.pallas_call(
        functools.partial(_conv1_kernel, cmid=Cmid, has_down=has_down),
        grid=(n_tiles,),
        in_specs=[pl.BlockSpec((TM, Cin), lambda i: (i, 0)),
                  pl.BlockSpec(w1c.shape, lambda i: (0, 0))],
        out_specs=out_specs1,
        out_shape=out_shapes1,
        compiler_params=cp,
    )(xs2d, w1c)
    if has_down:
        y1_raw, yd_raw, st1, std = res1
    else:
        (y1_raw, st1), yd_raw, std = res1, None, None

    bn1 = bn_scale_shift(st1, params["g1"], params["b1"])
    bnd = bn_scale_shift(std, params["gd"], params["bd"]) if has_down else None

    # ---- pass 2: BN1-apply + ReLU + 3x3 conv (im2col) + BN2 stat partials ---
    y1_4d = y1_raw.reshape(N, Ho, Wo, Cmid)
    y2_4d, st2 = pl.pallas_call(
        functools.partial(_conv2_kernel, ho=Ho, wo=Wo, cmid=Cmid),
        grid=(N,),
        in_specs=[pl.BlockSpec((1, Ho, Wo, Cmid), lambda n: (n, 0, 0, 0)),
                  pl.BlockSpec((2, Cmid), lambda n: (0, 0)),
                  pl.BlockSpec((9 * Cmid, Cmid), lambda n: (0, 0))],
        out_specs=[pl.BlockSpec((1, Ho, Wo, Cmid), lambda n: (n, 0, 0, 0)),
                   pl.BlockSpec((1, 8, Cmid), lambda n: (n, 0, 0))],
        out_shape=[jax.ShapeDtypeStruct((N, Ho, Wo, Cmid), f32),
                   jax.ShapeDtypeStruct((N, 8, Cmid), f32)],
        scratch_shapes=[pltpu.VMEM((Ho + 2, Wo + 2, Cmid), bf16),
                        pltpu.VMEM((Ho, Wo, 9 * Cmid), bf16)],
        compiler_params=cp,
    )(y1_4d, bn1, w2m)

    bn2 = bn_scale_shift(st2, params["g2"], params["b2"])

    # ---- pass 3: BN2-apply + ReLU + conv3 + BN3 stat partials ---------------
    y2_2d = y2_4d.reshape(M, Cmid)
    y3_raw, st3 = pl.pallas_call(
        functools.partial(_conv3_kernel, cout=Cout),
        grid=(n_tiles,),
        in_specs=[pl.BlockSpec((TM, Cmid), lambda i: (i, 0)),
                  pl.BlockSpec((2, Cmid), lambda i: (0, 0)),
                  pl.BlockSpec((Cmid, Cout), lambda i: (0, 0))],
        out_specs=[pl.BlockSpec((TM, Cout), lambda i: (i, 0)),
                   pl.BlockSpec((1, 8, Cout), lambda i: (i, 0, 0))],
        out_shape=[jax.ShapeDtypeStruct((M, Cout), f32),
                   jax.ShapeDtypeStruct((n_tiles, 8, Cout), f32)],
        compiler_params=cp,
    )(y2_2d, bn2, w3)

    bn3 = bn_scale_shift(st3, params["g3"], params["b3"])

    # ---- pass 4: BN3-apply (+BNd-apply) + residual add + ReLU ---------------
    res_src = yd_raw if has_down else xs2d
    in_specs4 = [pl.BlockSpec((TM, Cout), lambda i: (i, 0)),
                 pl.BlockSpec((TM, res_src.shape[1]), lambda i: (i, 0)),
                 pl.BlockSpec((2, Cout), lambda i: (0, 0))]
    ops4 = [y3_raw, res_src, bn3]
    if has_down:
        in_specs4.append(pl.BlockSpec((2, Cout), lambda i: (0, 0)))
        ops4.append(bnd)

    out = pl.pallas_call(
        functools.partial(_epilogue_kernel, has_down=has_down),
        grid=(n_tiles,),
        in_specs=in_specs4,
        out_specs=pl.BlockSpec((TM, Cout), lambda i: (i, 0)),
        out_shape=jax.ShapeDtypeStruct((M, Cout), f32),
        compiler_params=cp,
    )(*ops4)

    return out.reshape(N, Ho, Wo, Cout)


# ------------------------- pure-JAX reference (check) ----------------------- #
def ref_bottleneck(x_nhwc, params, stride):
    def conv(x, w_oihw, s, pad):
        return jax.lax.conv_general_dilated(
            x, w_oihw, window_strides=(s, s), padding=pad,
            dimension_numbers=("NHWC", "OIHW", "NHWC"))

    def bn(x, g, b):
        mean = jnp.mean(x, axis=(0, 1, 2), keepdims=True)
        var = jnp.mean(jnp.square(x - mean), axis=(0, 1, 2), keepdims=True)
        return (x - mean) * jax.lax.rsqrt(var + EPS) * g.reshape(1, 1, 1, -1) \
            + b.reshape(1, 1, 1, -1)

    Cin = x_nhwc.shape[-1]
    Cout = params["w3"].shape[1]
    w1_oihw = params["w1"].T[:, :, None, None]
    w3_oihw = params["w3"].T[:, :, None, None]

    out = jax.nn.relu(bn(conv(x_nhwc, w1_oihw, stride, "VALID"),
                         params["g1"], params["b1"]))
    out = jax.nn.relu(bn(conv(out, params["w2_oihw"], 1, ((1, 1), (1, 1))),
                         params["g2"], params["b2"]))
    out = bn(conv(out, w3_oihw, 1, "VALID"), params["g3"], params["b3"])
    if stride != 1 or Cin != Cout:
        wd_oihw = params["wd"].T[:, :, None, None]
        identity = bn(conv(x_nhwc, wd_oihw, stride, "VALID"),
                      params["gd"], params["bd"])
    else:
        identity = x_nhwc
    return jax.nn.relu(out + identity)


# ----------------------------------- main ----------------------------------- #
def _make_params(key, cin, cout):
    cmid = cout // 4  # int(out_channel / 4)
    ks = jax.random.split(key, 12)
    n = lambda k, s, sc=0.2: sc * jax.random.normal(k, s, jnp.float32)
    return {
        "w1": n(ks[0], (cin, cmid)),
        "g1": 1.0 + 0.1 * jax.random.normal(ks[1], (cmid,), jnp.float32),
        "b1": n(ks[2], (cmid,), 0.1),
        "w2_oihw": n(ks[3], (cmid, cmid, 3, 3)),
        "g2": 1.0 + 0.1 * jax.random.normal(ks[4], (cmid,), jnp.float32),
        "b2": n(ks[5], (cmid,), 0.1),
        "w3": n(ks[6], (cmid, cout)),
        "g3": 1.0 + 0.1 * jax.random.normal(ks[7], (cout,), jnp.float32),
        "b3": n(ks[8], (cout,), 0.1),
        "wd": n(ks[9], (cin, cout)),
        "gd": 1.0 + 0.1 * jax.random.normal(ks[10], (cout,), jnp.float32),
        "bd": n(ks[11], (cout,), 0.1),
    }


if __name__ == "__main__":
    key = jax.random.PRNGKey(0)
    cases = [
        # (N, Cin, H, W, Cout, stride)
        (2, 8, 16, 16, 32, 2),    # downsample branch (stride 2 + channel change)
        (2, 32, 16, 16, 32, 1),   # identity-shortcut branch
    ]
    for idx, (N, Cin, H, W, Cout, stride) in enumerate(cases):
        kp, kx, key = jax.random.split(key, 3)
        params = _make_params(kp, Cin, Cout)
        x_nchw = jax.random.normal(kx, (N, Cin, H, W), jnp.float32)  # torch layout
        x_nhwc = jnp.transpose(x_nchw, (0, 2, 3, 1))

        fwd = jax.jit(functools.partial(bottleneck_forward, row_tile=64),
                      static_argnums=(2,))
        out = jax.block_until_ready(fwd(x_nhwc, params, stride))
        ref = jax.block_until_ready(ref_bottleneck(x_nhwc, params, stride))

        assert out.shape == (N, H // stride, W // stride, Cout), out.shape
        max_err = float(jnp.max(jnp.abs(out - ref)))
        assert jnp.allclose(out, ref, atol=3e-2, rtol=3e-2), (
            f"case {idx}: max_err={max_err}")
    print("KERNEL_OK")
</pallas_src>

<mosaic_0001>
module attributes {stable_mosaic.version = 11 : i64} {
  func.func @_conv1_kernel(%arg0: i32, %arg1: memref<64x8xf32, #tpu.memory_space<vmem>>, %arg2: memref<8x40xbf16, #tpu.memory_space<vmem>>, %arg3: memref<64x8xf32, #tpu.memory_space<vmem>>, %arg4: memref<64x32xf32, #tpu.memory_space<vmem>>, %arg5: memref<1x8x8xf32, #tpu.memory_space<vmem>>, %arg6: memref<1x8x32xf32, #tpu.memory_space<vmem>>) attributes {dimension_semantics = [#tpu.dimension_semantics<parallel>], iteration_bounds = array<i64: 2>, scalar_prefetch = 0 : i64, scratch_operands = 0 : i64, tpu.core_type = #tpu.core_type<tc>, window_params = [{transform_indices = @transform_0, window_bounds = array<i64: 64, 8>}, {pipeline_mode = #tpu.pipeline_mode<synchronous>, transform_indices = @transform_1, window_bounds = array<i64: 8, 40>}, {transform_indices = @transform_2, window_bounds = array<i64: 64, 8>}, {transform_indices = @transform_3, window_bounds = array<i64: 64, 32>}, {transform_indices = @transform_4, window_bounds = array<i64: 1, 8, 8>}, {transform_indices = @transform_5, window_bounds = array<i64: 1, 8, 32>}]} {
    %c0 = arith.constant 0 : index
    %c0_0 = arith.constant 0 : index
    %0 = vector.load %arg1[%c0, %c0_0] : memref<64x8xf32, #tpu.memory_space<vmem>>, vector<64x8xf32>
    %1 = arith.truncf %0 : vector<64x8xf32> to vector<64x8xbf16>
    %c0_1 = arith.constant 0 : index
    %c0_2 = arith.constant 0 : index
    %2 = vector.load %arg2[%c0_1, %c0_2] : memref<8x40xbf16, #tpu.memory_space<vmem>>, vector<8x40xbf16>
    %cst = arith.constant dense<0.000000e+00> : vector<64x40xf32>
    %3 = tpu.matmul %1, %2, %cst {dimension_numbers = #tpu.dot_dimension_numbers<[1], [0], [0], [1], [0, 0, 1, 1], [], []>} : vector<64x8xbf16>, vector<8x40xbf16>, vector<64x40xf32> -> vector<64x40xf32>
    %4 = vector.extract_strided_slice %3 {offsets = [0, 0], sizes = [64, 8], strides = [1, 1]} : vector<64x40xf32> to vector<64x8xf32>
    %c0_3 = arith.constant 0 : index
    %c0_4 = arith.constant 0 : index
    %5 = vector.load %arg3[%c0_3, %c0_4] : memref<64x8xf32, #tpu.memory_space<vmem>>, vector<64x8xf32>
    tpu.vector_store %arg3[%c0_3, %c0_4], %4 {strides = array<i32>} : memref<64x8xf32, #tpu.memory_space<vmem>>, vector<64x8xf32>,
    %cst_5 = arith.constant dense<0.000000e+00> : vector<8xf32>
    %6 = vector.multi_reduction <add>, %4, %cst_5 [0] : vector<64x8xf32> to vector<8xf32>
    %7 = vector.shape_cast %6 : vector<8xf32> to vector<1x8xf32>
    %8 = arith.mulf %4, %4 : vector<64x8xf32>
    %cst_6 = arith.constant dense<0.000000e+00> : vector<8xf32>
    %9 = vector.multi_reduction <add>, %8, %cst_6 [0] : vector<64x8xf32> to vector<8xf32>
    %10 = vector.shape_cast %9 : vector<8xf32> to vector<1x8xf32>
    %cst_7 = arith.constant 0.000000e+00 : f32
    %11 = vector.broadcast %cst_7 : f32 to vector<6x8xf32>
    %12 = tpu.concatenate %7, %10, %11 in 0 : vector<1x8xf32>, vector<1x8xf32>, vector<6x8xf32> -> vector<8x8xf32>
    %13 = vector.shape_cast %12 : vector<8x8xf32> to vector<1x8x8xf32>
    %c0_8 = arith.constant 0 : index
    %c0_9 = arith.constant 0 : index
    %c0_10 = arith.constant 0 : index
    %14 = vector.load %arg5[%c0_8, %c0_9, %c0_10] : memref<1x8x8xf32, #tpu.memory_space<vmem>>, vector<1x8x8xf32>
    tpu.vector_store %arg5[%c0_8, %c0_9, %c0_10], %13 {strides = array<i32>} : memref<1x8x8xf32, #tpu.memory_space<vmem>>, vector<1x8x8xf32>,
    %15 = vector.extract_strided_slice %3 {offsets = [0, 8], sizes = [64, 32], strides = [1, 1]} : vector<64x40xf32> to vector<64x32xf32>
    %c0_11 = arith.constant 0 : index
    %c0_12 = arith.constant 0 : index
    %16 = vector.load %arg4[%c0_11, %c0_12] : memref<64x32xf32, #tpu.memory_space<vmem>>, vector<64x32xf32>
    tpu.vector_store %arg4[%c0_11, %c0_12], %15 {strides = array<i32>} : memref<64x32xf32, #tpu.memory_space<vmem>>, vector<64x32xf32>,
    %cst_13 = arith.constant dense<0.000000e+00> : vector<32xf32>
    %17 = vector.multi_reduction <add>, %15, %cst_13 [0] : vector<64x32xf32> to vector<32xf32>
    %18 = vector.shape_cast %17 : vector<32xf32> to vector<1x32xf32>
    %19 = arith.mulf %15, %15 : vector<64x32xf32>
    %cst_14 = arith.constant dense<0.000000e+00> : vector<32xf32>
    %20 = vector.multi_reduction <add>, %19, %cst_14 [0] : vector<64x32xf32> to vector<32xf32>
    %21 = vector.shape_cast %20 : vector<32xf32> to vector<1x32xf32>
    %cst_15 = arith.constant 0.000000e+00 : f32
    %22 = vector.broadcast %cst_15 : f32 to vector<6x32xf32>
    %23 = tpu.concatenate %18, %21, %22 in 0 : vector<1x32xf32>, vector<1x32xf32>, vector<6x32xf32> -> vector<8x32xf32>
    %24 = vector.shape_cast %23 : vector<8x32xf32> to vector<1x8x32xf32>
    %c0_16 = arith.constant 0 : index
    %c0_17 = arith.constant 0 : index
    %c0_18 = arith.constant 0 : index
    %25 = vector.load %arg6[%c0_16, %c0_17, %c0_18] : memref<1x8x32xf32, #tpu.memory_space<vmem>>, vector<1x8x32xf32>
    tpu.vector_store %arg6[%c0_16, %c0_17, %c0_18], %24 {strides = array<i32>} : memref<1x8x32xf32, #tpu.memory_space<vmem>>, vector<1x8x32xf32>,
    return
  }
  func.func @transform_0(%arg0: i32) -> (i32, i32) {
    %c0_i32 = arith.constant 0 : i32
    %c0_i32_0 = arith.constant 0 : i32
    return %arg0, %c0_i32 : i32, i32
  }
  func.func @transform_1(%arg0: i32) -> (i32, i32) {
    %c0_i32 = arith.constant 0 : i32
    %c0_i32_0 = arith.constant 0 : i32
    %c0_i32_1 = arith.constant 0 : i32
    return %c0_i32, %c0_i32_0 : i32, i32
  }
  func.func @transform_2(%arg0: i32) -> (i32, i32) {
    %c0_i32 = arith.constant 0 : i32
    %c0_i32_0 = arith.constant 0 : i32
    return %arg0, %c0_i32 : i32, i32
  }
  func.func @transform_3(%arg0: i32) -> (i32, i32) {
    %c0_i32 = arith.constant 0 : i32
    %c0_i32_0 = arith.constant 0 : i32
    return %arg0, %c0_i32 : i32, i32
  }
  func.func @transform_4(%arg0: i32) -> (i32, i32, i32) {
    %c0_i32 = arith.constant 0 : i32
    %c0_i32_0 = arith.constant 0 : i32
    %c0_i32_1 = arith.constant 0 : i32
    return %arg0, %c0_i32, %c0_i32_0 : i32, i32, i32
  }
  func.func @transform_5(%arg0: i32) -> (i32, i32, i32) {
    %c0_i32 = arith.constant 0 : i32
    %c0_i32_0 = arith.constant 0 : i32
    %c0_i32_1 = arith.constant 0 : i32
    return %arg0, %c0_i32, %c0_i32_0 : i32, i32, i32
  }
}

module attributes {stable_mosaic.version = 11 : i64} {
  func.func @_conv2_kernel(%arg0: i32, %arg1: memref<1x8x8x8xf32, #tpu.memory_space<vmem>>, %arg2: memref<2x8xf32, #tpu.memory_space<vmem>>, %arg3: memref<72x8xbf16, #tpu.memory_space<vmem>>, %arg4: memref<1x8x8x8xf32, #tpu.memory_space<vmem>>, %arg5: memref<1x8x8xf32, #tpu.memory_space<vmem>>, %arg6: memref<10x10x8xbf16, #tpu.memory_space<vmem>>, %arg7: memref<8x8x72xbf16, #tpu.memory_space<vmem>>) attributes {dimension_semantics = [#tpu.dimension_semantics<parallel>], iteration_bounds = array<i64: 2>, scalar_prefetch = 0 : i64, scratch_operands = 2 : i64, tpu.core_type = #tpu.core_type<tc>, window_params = [{transform_indices = @transform_0, window_bounds = array<i64: 1, 8, 8, 8>}, {pipeline_mode = #tpu.pipeline_mode<synchronous>, transform_indices = @transform_1, window_bounds = array<i64: 2, 8>}, {pipeline_mode = #tpu.pipeline_mode<synchronous>, transform_indices = @transform_2, window_bounds = array<i64: 72, 8>}, {transform_indices = @transform_3, window_bounds = array<i64: 1, 8, 8, 8>}, {transform_indices = @transform_4, window_bounds = array<i64: 1, 8, 8>}]} {
    %c0 = arith.constant 0 : index
    %c0_0 = arith.constant 0 : index
    %c0_1 = arith.constant 0 : index
    %c0_2 = arith.constant 0 : index
    %0 = vector.load %arg1[%c0, %c0_0, %c0_1, %c0_2] : memref<1x8x8x8xf32, #tpu.memory_space<vmem>>, vector<1x8x8x8xf32>
    %1 = vector.shape_cast %0 : vector<1x8x8x8xf32> to vector<8x8x8xf32>
    %c0_3 = arith.constant 0 : index
    %c0_4 = arith.constant 0 : index
    %2 = vector.load %arg2[%c0_3, %c0_4] : memref<2x8xf32, #tpu.memory_space<vmem>>, vector<1x8xf32>
    %3 = vector.shape_cast %2 : vector<1x8xf32> to vector<1x1x8xf32>
    %4 = vector.broadcast %3 : vector<1x1x8xf32> to vector<8x8x8xf32>
    %5 = arith.mulf %1, %4 : vector<8x8x8xf32>
    %c1 = arith.constant 1 : index
    %c0_5 = arith.constant 0 : index
    %6 = vector.load %arg2[%c1, %c0_5] : memref<2x8xf32, #tpu.memory_space<vmem>>, vector<1x8xf32>
    %7 = vector.shape_cast %6 : vector<1x8xf32> to vector<1x1x8xf32>
    %8 = vector.broadcast %7 : vector<1x1x8xf32> to vector<8x8x8xf32>
    %9 = arith.addf %5, %8 : vector<8x8x8xf32>
    %cst = arith.constant 0.000000e+00 : f32
    %10 = vector.broadcast %cst : f32 to vector<8x8x8xf32>
    %11 = arith.maximumf %9, %10 : vector<8x8x8xf32>
    %12 = arith.truncf %11 : vector<8x8x8xf32> to vector<8x8x8xbf16>
    %cst_6 = arith.constant 0.000000e+00 : bf16
    %13 = vector.broadcast %cst_6 : bf16 to vector<1x10x8xbf16>
    %c0_7 = arith.constant 0 : index
    %c0_8 = arith.constant 0 : index
    %c0_9 = arith.constant 0 : index
    %14 = vector.load %arg6[%c0_7, %c0_8, %c0_9] : memref<10x10x8xbf16, #tpu.memory_space<vmem>>, vector<1x10x8xbf16>
    tpu.vector_store %arg6[%c0_7, %c0_8, %c0_9], %13 {strides = array<i32>} : memref<10x10x8xbf16, #tpu.memory_space<vmem>>, vector<1x10x8xbf16>,
    %cst_10 = arith.constant 0.000000e+00 : bf16
    %15 = vector.broadcast %cst_10 : bf16 to vector<1x10x8xbf16>
    %c9 = arith.constant 9 : index
    %c0_11 = arith.constant 0 : index
    %c0_12 = arith.constant 0 : index
    %16 = vector.load %arg6[%c9, %c0_11, %c0_12] : memref<10x10x8xbf16, #tpu.memory_space<vmem>>, vector<1x10x8xbf16>
    tpu.vector_store %arg6[%c9, %c0_11, %c0_12], %15 {strides = array<i32>} : memref<10x10x8xbf16, #tpu.memory_space<vmem>>, vector<1x10x8xbf16>,
    %cst_13 = arith.constant 0.000000e+00 : bf16
    %17 = vector.broadcast %cst_13 : bf16 to vector<10x1x8xbf16>
    %c0_14 = arith.constant 0 : index
    %c0_15 = arith.constant 0 : index
    %c0_16 = arith.constant 0 : index
    %18 = vector.load %arg6[%c0_14, %c0_15, %c0_16] : memref<10x10x8xbf16, #tpu.memory_space<vmem>>, vector<10x1x8xbf16>
    tpu.vector_store %arg6[%c0_14, %c0_15, %c0_16], %17 {strides = array<i32>} : memref<10x10x8xbf16, #tpu.memory_space<vmem>>, vector<10x1x8xbf16>,
    %cst_17 = arith.constant 0.000000e+00 : bf16
    %19 = vector.broadcast %cst_17 : bf16 to vector<10x1x8xbf16>
    %c0_18 = arith.constant 0 : index
    %c9_19 = arith.constant 9 : index
    %c0_20 = arith.constant 0 : index
    %20 = vector.load %arg6[%c0_18, %c9_19, %c0_20] : memref<10x10x8xbf16, #tpu.memory_space<vmem>>, vector<10x1x8xbf16>
    tpu.vector_store %arg6[%c0_18, %c9_19, %c0_20], %19 {strides = array<i32>} : memref<10x10x8xbf16, #tpu.memory_space<vmem>>, vector<10x1x8xbf16>,
    %c1_21 = arith.constant 1 : index
    %c1_22 = arith.constant 1 : index
    %c0_23 = arith.constant 0 : index
    %21 = vector.load %arg6[%c1_21, %c1_22, %c0_23] : memref<10x10x8xbf16, #tpu.memory_space<vmem>>, vector<8x8x8xbf16>
    tpu.vector_store %arg6[%c1_21, %c1_22, %c0_23], %12 {strides = array<i32>} : memref<10x10x8xbf16, #tpu.memory_space<vmem>>, vector<8x8x8xbf16>,
    %c0_24 = arith.constant 0 : index
    %c0_25 = arith.constant 0 : index
    %c0_26 = arith.constant 0 : index
    %22 = vector.load %arg6[%c0_24, %c0_25, %c0_26] : memref<10x10x8xbf16, #tpu.memory_space<vmem>>, vector<8x8x8xbf16>
    %c0_27 = arith.constant 0 : index
    %c0_28 = arith.constant 0 : index
    %c0_29 = arith.constant 0 : index
    %23 = vector.load %arg7[%c0_27, %c0_28, %c0_29] : memref<8x8x72xbf16, #tpu.memory_space<vmem>>, vector<8x8x8xbf16>
    tpu.vector_store %arg7[%c0_27, %c0_28, %c0_29], %22 {strides = array<i32>} : memref<8x8x72xbf16, #tpu.memory_space<vmem>>, vector<8x8x8xbf16>,
    %c0_30 = arith.constant 0 : index
    %c1_31 = arith.constant 1 : index
    %c0_32 = arith.constant 0 : index
    %24 = vector.load %arg6[%c0_30, %c1_31, %c0_32] : memref<10x10x8xbf16, #tpu.memory_space<vmem>>, vector<8x8x8xbf16>
    %c0_33 = arith.constant 0 : index
    %c0_34 = arith.constant 0 : index
    %c8 = arith.constant 8 : index
    %25 = vector.load %arg7[%c0_33, %c0_34, %c8] : memref<8x8x72xbf16, #tpu.memory_space<vmem>>, vector<8x8x8xbf16>
    tpu.vector_store %arg7[%c0_33, %c0_34, %c8], %24 {strides = array<i32>} : memref<8x8x72xbf16, #tpu.memory_space<vmem>>, vector<8x8x8xbf16>,
    %c0_35 = arith.constant 0 : index
    %c2 = arith.constant 2 : index
    %c0_36 = arith.constant 0 : index
    %26 = vector.load %arg6[%c0_35, %c2, %c0_36] : memref<10x10x8xbf16, #tpu.memory_space<vmem>>, vector<8x8x8xbf16>
    %c0_37 = arith.constant 0 : index
    %c0_38 = arith.constant 0 : index
    %c16 = arith.constant 16 : index
    %27 = vector.load %arg7[%c0_37, %c0_38, %c16] : memref<8x8x72xbf16, #tpu.memory_space<vmem>>, vector<8x8x8xbf16>
    tpu.vector_store %arg7[%c0_37, %c0_38, %c16], %26 {strides = array<i32>} : memref<8x8x72xbf16, #tpu.memory_space<vmem>>, vector<8x8x8xbf16>,
    %c1_39 = arith.constant 1 : index
    %c0_40 = arith.constant 0 : index
    %c0_41 = arith.constant 0 : index
    %28 = vector.load %arg6[%c1_39, %c0_40, %c0_41] : memref<10x10x8xbf16, #tpu.memory_space<vmem>>, vector<8x8x8xbf16>
    %c0_42 = arith.constant 0 : index
    %c0_43 = arith.constant 0 : index
    %c24 = arith.constant 24 : index
    %29 = vector.load %arg7[%c0_42, %c0_43, %c24] : memref<8x8x72xbf16, #tpu.memory_space<vmem>>, vector<8x8x8xbf16>
    tpu.vector_store %arg7[%c0_42, %c0_43, %c24], %28 {strides = array<i32>} : memref<8x8x72xbf16, #tpu.memory_space<vmem>>, vector<8x8x8xbf16>,
    %c1_44 = arith.constant 1 : index
    %c1_45 = arith.constant 1 : index
    %c0_46 = arith.constant 0 : index
    %30 = vector.load %arg6[%c1_44, %c1_45, %c0_46] : memref<10x10x8xbf16, #tpu.memory_space<vmem>>, vector<8x8x8xbf16>
    %c0_47 = arith.constant 0 : index
    %c0_48 = arith.constant 0 : index
    %c32 = arith.constant 32 : index
    %31 = vector.load %arg7[%c0_47, %c0_48, %c32] : memref<8x8x72xbf16, #tpu.memory_space<vmem>>, vector<8x8x8xbf16>
    tpu.vector_store %arg7[%c0_47, %c0_48, %c32], %30 {strides = array<i32>} : memref<8x8x72xbf16, #tpu.memory_space<vmem>>, vector<8x8x8xbf16>,
    %c1_49 = arith.constant 1 : index
    %c2_50 = arith.constant 2 : index
    %c0_51 = arith.constant 0 : index
    %32 = vector.load %arg6[%c1_49, %c2_50, %c0_51] : memref<10x10x8xbf16, #tpu.memory_space<vmem>>, vector<8x8x8xbf16>
    %c0_52 = arith.constant 0 : index
    %c0_53 = arith.constant 0 : index
    %c40 = arith.constant 40 : index
    %33 = vector.load %arg7[%c0_52, %c0_53, %c40] : memref<8x8x72xbf16, #tpu.memory_space<vmem>>, vector<8x8x8xbf16>
    tpu.vector_store %arg7[%c0_52, %c0_53, %c40], %32 {strides = array<i32>} : memref<8x8x72xbf16, #tpu.memory_space<vmem>>, vector<8x8x8xbf16>,
    %c2_54 = arith.constant 2 : index
    %c0_55 = arith.constant 0 : index
    %c0_56 = arith.constant 0 : index
    %34 = vector.load %arg6[%c2_54, %c0_55, %c0_56] : memref<10x10x8xbf16, #tpu.memory_space<vmem>>, vector<8x8x8xbf16>
    %c0_57 = arith.constant 0 : index
    %c0_58 = arith.constant 0 : index
    %c48 = arith.constant 48 : index
    %35 = vector.load %arg7[%c0_57, %c0_58, %c48] : memref<8x8x72xbf16, #tpu.memory_space<vmem>>, vector<8x8x8xbf16>
    tpu.vector_store %arg7[%c0_57, %c0_58, %c48], %34 {strides = array<i32>} : memref<8x8x72xbf16, #tpu.memory_space<vmem>>, vector<8x8x8xbf16>,
    %c2_59 = arith.constant 2 : index
    %c1_60 = arith.constant 1 : index
    %c0_61 = arith.constant 0 : index
    %36 = vector.load %arg6[%c2_59, %c1_60, %c0_61] : memref<10x10x8xbf16, #tpu.memory_space<vmem>>, vector<8x8x8xbf16>
    %c0_62 = arith.constant 0 : index
    %c0_63 = arith.constant 0 : index
    %c56 = arith.constant 56 : index
    %37 = vector.load %arg7[%c0_62, %c0_63, %c56] : memref<8x8x72xbf16, #tpu.memory_space<vmem>>, vector<8x8x8xbf16>
    tpu.vector_store %arg7[%c0_62, %c0_63, %c56], %36 {strides = array<i32>} : memref<8x8x72xbf16, #tpu.memory_space<vmem>>, vector<8x8x8xbf16>,
    %c2_64 = arith.constant 2 : index
    %c2_65 = arith.constant 2 : index
    %c0_66 = arith.constant 0 : index
    %38 = vector.load %arg6[%c2_64, %c2_65, %c0_66] : memref<10x10x8xbf16, #tpu.memory_space<vmem>>, vector<8x8x8xbf16>
    %c0_67 = arith.constant 0 : index
    %c0_68 = arith.constant 0 : index
    %c64 = arith.constant 64 : index
    %39 = vector.load %arg7[%c0_67, %c0_68, %c64] : memref<8x8x72xbf16, #tpu.memory_space<vmem>>, vector<8x8x8xbf16>
    tpu.vector_store %arg7[%c0_67, %c0_68, %c64], %38 {strides = array<i32>} : memref<8x8x72xbf16, #tpu.memory_space<vmem>>, vector<8x8x8xbf16>,
    %c0_69 = arith.constant 0 : index
    %c0_70 = arith.constant 0 : index
    %c0_71 = arith.constant 0 : index
    %40 = vector.load %arg7[%c0_69, %c0_70, %c0_71] : memref<8x8x72xbf16, #tpu.memory_space<vmem>>, vector<8x8x72xbf16>
    %41 = vector.shape_cast %40 : vector<8x8x72xbf16> to vector<64x72xbf16>
    %c0_72 = arith.constant 0 : index
    %c0_73 = arith.constant 0 : index
    %42 = vector.load %arg3[%c0_72, %c0_73] : memref<72x8xbf16, #tpu.memory_space<vmem>>, vector<72x8xbf16>
    %cst_74 = arith.constant dense<0.000000e+00> : vector<64x8xf32>
    %43 = tpu.matmul %41, %42, %cst_74 {dimension_numbers = #tpu.dot_dimension_numbers<[1], [0], [0], [1], [0, 0, 1, 1], [], []>} : vector<64x72xbf16>, vector<72x8xbf16>, vector<64x8xf32> -> vector<64x8xf32>
    %cst_75 = arith.constant dense<0.000000e+00> : vector<8xf32>
    %44 = vector.multi_reduction <add>, %43, %cst_75 [0] : vector<64x8xf32> to vector<8xf32>
    %45 = vector.shape_cast %44 : vector<8xf32> to vector<1x8xf32>
    %46 = arith.mulf %43, %43 : vector<64x8xf32>
    %cst_76 = arith.constant dense<0.000000e+00> : vector<8xf32>
    %47 = vector.multi_reduction <add>, %46, %cst_76 [0] : vector<64x8xf32> to vector<8xf32>
    %48 = vector.shape_cast %47 : vector<8xf32> to vector<1x8xf32>
    %cst_77 = arith.constant 0.000000e+00 : f32
    %49 = vector.broadcast %cst_77 : f32 to vector<6x8xf32>
    %50 = tpu.concatenate %45, %48, %49 in 0 : vector<1x8xf32>, vector<1x8xf32>, vector<6x8xf32> -> vector<8x8xf32>
    %51 = vector.shape_cast %50 : vector<8x8xf32> to vector<1x8x8xf32>
    %c0_78 = arith.constant 0 : index
    %c0_79 = arith.constant 0 : index
    %c0_80 = arith.constant 0 : index
    %52 = vector.load %arg5[%c0_78, %c0_79, %c0_80] : memref<1x8x8xf32, #tpu.memory_space<vmem>>, vector<1x8x8xf32>
    tpu.vector_store %arg5[%c0_78, %c0_79, %c0_80], %51 {strides = array<i32>} : memref<1x8x8xf32, #tpu.memory_space<vmem>>, vector<1x8x8xf32>,
    %53 = vector.shape_cast %43 : vector<64x8xf32> to vector<1x8x8x8xf32>
    %c0_81 = arith.constant 0 : index
    %c0_82 = arith.constant 0 : index
    %c0_83 = arith.constant 0 : index
    %c0_84 = arith.constant 0 : index
    %54 = vector.load %arg4[%c0_81, %c0_82, %c0_83, %c0_84] : memref<1x8x8x8xf32, #tpu.memory_space<vmem>>, vector<1x8x8x8xf32>
    tpu.vector_store %arg4[%c0_81, %c0_82, %c0_83, %c0_84], %53 {strides = array<i32>} : memref<1x8x8x8xf32, #tpu.memory_space<vmem>>, vector<1x8x8x8xf32>,
    return
  }
  func.func @transform_0(%arg0: i32) -> (i32, i32, i32, i32) {
    %c0_i32 = arith.constant 0 : i32
    %c0_i32_0 = arith.constant 0 : i32
    %c0_i32_1 = arith.constant 0 : i32
    %c0_i32_2 = arith.constant 0 : i32
    return %arg0, %c0_i32, %c0_i32_0, %c0_i32_1 : i32, i32, i32, i32
  }
  func.func @transform_1(%arg0: i32) -> (i32, i32) {
    %c0_i32 = arith.constant 0 : i32
    %c0_i32_0 = arith.constant 0 : i32
    %c0_i32_1 = arith.constant 0 : i32
    return %c0_i32, %c0_i32_0 : i32, i32
  }
  func.func @transform_2(%arg0: i32) -> (i32, i32) {
    %c0_i32 = arith.constant 0 : i32
    %c0_i32_0 = arith.constant 0 : i32
    %c0_i32_1 = arith.constant 0 : i32
    return %c0_i32, %c0_i32_0 : i32, i32
  }
  func.func @transform_3(%arg0: i32) -> (i32, i32, i32, i32) {
    %c0_i32 = arith.constant 0 : i32
    %c0_i32_0 = arith.constant 0 : i32
    %c0_i32_1 = arith.constant 0 : i32
    %c0_i32_2 = arith.constant 0 : i32
    return %arg0, %c0_i32, %c0_i32_0, %c0_i32_1 : i32, i32, i32, i32
  }
  func.func @transform_4(%arg0: i32) -> (i32, i32, i32) {
    %c0_i32 = arith.constant 0 : i32
    %c0_i32_0 = arith.constant 0 : i32
    %c0_i32_1 = arith.constant 0 : i32
    return %arg0, %c0_i32, %c0_i32_0 : i32, i32, i32
  }
}

module attributes {stable_mosaic.version = 11 : i64} {
  func.func @_conv3_kernel(%arg0: i32, %arg1: memref<64x8xf32, #tpu.memory_space<vmem>>, %arg2: memref<2x8xf32, #tpu.memory_space<vmem>>, %arg3: memref<8x32xbf16, #tpu.memory_space<vmem>>, %arg4: memref<64x32xf32, #tpu.memory_space<vmem>>, %arg5: memref<1x8x32xf32, #tpu.memory_space<vmem>>) attributes {dimension_semantics = [#tpu.dimension_semantics<parallel>], iteration_bounds = array<i64: 2>, scalar_prefetch = 0 : i64, scratch_operands = 0 : i64, tpu.core_type = #tpu.core_type<tc>, window_params = [{transform_indices = @transform_0, window_bounds = array<i64: 64, 8>}, {pipeline_mode = #tpu.pipeline_mode<synchronous>, transform_indices = @transform_1, window_bounds = array<i64: 2, 8>}, {pipeline_mode = #tpu.pipeline_mode<synchronous>, transform_indices = @transform_2, window_bounds = array<i64: 8, 32>}, {transform_indices = @transform_3, window_bounds = array<i64: 64, 32>}, {transform_indices = @transform_4, window_bounds = array<i64: 1, 8, 32>}]} {
    %c0 = arith.constant 0 : index
    %c0_0 = arith.constant 0 : index
    %0 = vector.load %arg1[%c0, %c0_0] : memref<64x8xf32, #tpu.memory_space<vmem>>, vector<64x8xf32>
    %c0_1 = arith.constant 0 : index
    %c0_2 = arith.constant 0 : index
    %1 = vector.load %arg2[%c0_1, %c0_2] : memref<2x8xf32, #tpu.memory_space<vmem>>, vector<1x8xf32>
    %2 = vector.broadcast %1 : vector<1x8xf32> to vector<64x8xf32>
    %3 = arith.mulf %0, %2 : vector<64x8xf32>
    %c1 = arith.constant 1 : index
    %c0_3 = arith.constant 0 : index
    %4 = vector.load %arg2[%c1, %c0_3] : memref<2x8xf32, #tpu.memory_space<vmem>>, vector<1x8xf32>
    %5 = vector.broadcast %4 : vector<1x8xf32> to vector<64x8xf32>
    %6 = arith.addf %3, %5 : vector<64x8xf32>
    %cst = arith.constant 0.000000e+00 : f32
    %7 = vector.broadcast %cst : f32 to vector<64x8xf32>
    %8 = arith.maximumf %6, %7 : vector<64x8xf32>
    %9 = arith.truncf %8 : vector<64x8xf32> to vector<64x8xbf16>
    %c0_4 = arith.constant 0 : index
    %c0_5 = arith.constant 0 : index
    %10 = vector.load %arg3[%c0_4, %c0_5] : memref<8x32xbf16, #tpu.memory_space<vmem>>, vector<8x32xbf16>
    %cst_6 = arith.constant dense<0.000000e+00> : vector<64x32xf32>
    %11 = tpu.matmul %9, %10, %cst_6 {dimension_numbers = #tpu.dot_dimension_numbers<[1], [0], [0], [1], [0, 0, 1, 1], [], []>} : vector<64x8xbf16>, vector<8x32xbf16>, vector<64x32xf32> -> vector<64x32xf32>
    %c0_7 = arith.constant 0 : index
    %c0_8 = arith.constant 0 : index
    %12 = vector.load %arg4[%c0_7, %c0_8] : memref<64x32xf32, #tpu.memory_space<vmem>>, vector<64x32xf32>
    tpu.vector_store %arg4[%c0_7, %c0_8], %11 {strides = array<i32>} : memref<64x32xf32, #tpu.memory_space<vmem>>, vector<64x32xf32>,
    %cst_9 = arith.constant dense<0.000000e+00> : vector<32xf32>
    %13 = vector.multi_reduction <add>, %11, %cst_9 [0] : vector<64x32xf32> to vector<32xf32>
    %14 = vector.shape_cast %13 : vector<32xf32> to vector<1x32xf32>
    %15 = arith.mulf %11, %11 : vector<64x32xf32>
    %cst_10 = arith.constant dense<0.000000e+00> : vector<32xf32>
    %16 = vector.multi_reduction <add>, %15, %cst_10 [0] : vector<64x32xf32> to vector<32xf32>
    %17 = vector.shape_cast %16 : vector<32xf32> to vector<1x32xf32>
    %cst_11 = arith.constant 0.000000e+00 : f32
    %18 = vector.broadcast %cst_11 : f32 to vector<6x32xf32>
    %19 = tpu.concatenate %14, %17, %18 in 0 : vector<1x32xf32>, vector<1x32xf32>, vector<6x32xf32> -> vector<8x32xf32>
    %20 = vector.shape_cast %19 : vector<8x32xf32> to vector<1x8x32xf32>
    %c0_12 = arith.constant 0 : index
    %c0_13 = arith.constant 0 : index
    %c0_14 = arith.constant 0 : index
    %21 = vector.load %arg5[%c0_12, %c0_13, %c0_14] : memref<1x8x32xf32, #tpu.memory_space<vmem>>, vector<1x8x32xf32>
    tpu.vector_store %arg5[%c0_12, %c0_13, %c0_14], %20 {strides = array<i32>} : memref<1x8x32xf32, #tpu.memory_space<vmem>>, vector<1x8x32xf32>,
    return
  }
  func.func @transform_0(%arg0: i32) -> (i32, i32) {
    %c0_i32 = arith.constant 0 : i32
    %c0_i32_0 = arith.constant 0 : i32
    return %arg0, %c0_i32 : i32, i32
  }
  func.func @transform_1(%arg0: i32) -> (i32, i32) {
    %c0_i32 = arith.constant 0 : i32
    %c0_i32_0 = arith.constant 0 : i32
    %c0_i32_1 = arith.constant 0 : i32
    return %c0_i32, %c0_i32_0 : i32, i32
  }
  func.func @transform_2(%arg0: i32) -> (i32, i32) {
    %c0_i32 = arith.constant 0 : i32
    %c0_i32_0 = arith.constant 0 : i32
    %c0_i32_1 = arith.constant 0 : i32
    return %c0_i32, %c0_i32_0 : i32, i32
  }
  func.func @transform_3(%arg0: i32) -> (i32, i32) {
    %c0_i32 = arith.constant 0 : i32
    %c0_i32_0 = arith.constant 0 : i32
    return %arg0, %c0_i32 : i32, i32
  }
  func.func @transform_4(%arg0: i32) -> (i32, i32, i32) {
    %c0_i32 = arith.constant 0 : i32
    %c0_i32_0 = arith.constant 0 : i32
    %c0_i32_1 = arith.constant 0 : i32
    return %arg0, %c0_i32, %c0_i32_0 : i32, i32, i32
  }
}

module attributes {stable_mosaic.version = 11 : i64} {
  func.func @_epilogue_kernel(%arg0: i32, %arg1: memref<64x32xf32, #tpu.memory_space<vmem>>, %arg2: memref<64x32xf32, #tpu.memory_space<vmem>>, %arg3: memref<2x32xf32, #tpu.memory_space<vmem>>, %arg4: memref<2x32xf32, #tpu.memory_space<vmem>>, %arg5: memref<64x32xf32, #tpu.memory_space<vmem>>) attributes {dimension_semantics = [#tpu.dimension_semantics<parallel>], iteration_bounds = array<i64: 2>, scalar_prefetch = 0 : i64, scratch_operands = 0 : i64, tpu.core_type = #tpu.core_type<tc>, window_params = [{transform_indices = @transform_0, window_bounds = array<i64: 64, 32>}, {transform_indices = @transform_1, window_bounds = array<i64: 64, 32>}, {pipeline_mode = #tpu.pipeline_mode<synchronous>, transform_indices = @transform_2, window_bounds = array<i64: 2, 32>}, {pipeline_mode = #tpu.pipeline_mode<synchronous>, transform_indices = @transform_3, window_bounds = array<i64: 2, 32>}, {transform_indices = @transform_4, window_bounds = array<i64: 64, 32>}]} {
    %c0 = arith.constant 0 : index
    %c0_0 = arith.constant 0 : index
    %0 = vector.load %arg2[%c0, %c0_0] : memref<64x32xf32, #tpu.memory_space<vmem>>, vector<64x32xf32>
    %c0_1 = arith.constant 0 : index
    %c0_2 = arith.constant 0 : index
    %1 = vector.load %arg4[%c0_1, %c0_2] : memref<2x32xf32, #tpu.memory_space<vmem>>, vector<1x32xf32>
    %2 = vector.broadcast %1 : vector<1x32xf32> to vector<64x32xf32>
    %3 = arith.mulf %0, %2 : vector<64x32xf32>
    %c1 = arith.constant 1 : index
    %c0_3 = arith.constant 0 : index
    %4 = vector.load %arg4[%c1, %c0_3] : memref<2x32xf32, #tpu.memory_space<vmem>>, vector<1x32xf32>
    %5 = vector.broadcast %4 : vector<1x32xf32> to vector<64x32xf32>
    %6 = arith.addf %3, %5 : vector<64x32xf32>
    %c0_4 = arith.constant 0 : index
    %c0_5 = arith.constant 0 : index
    %7 = vector.load %arg1[%c0_4, %c0_5] : memref<64x32xf32, #tpu.memory_space<vmem>>, vector<64x32xf32>
    %c0_6 = arith.constant 0 : index
    %c0_7 = arith.constant 0 : index
    %8 = vector.load %arg3[%c0_6, %c0_7] : memref<2x32xf32, #tpu.memory_space<vmem>>, vector<1x32xf32>
    %9 = vector.broadcast %8 : vector<1x32xf32> to vector<64x32xf32>
    %10 = arith.mulf %7, %9 : vector<64x32xf32>
    %c1_8 = arith.constant 1 : index
    %c0_9 = arith.constant 0 : index
    %11 = vector.load %arg3[%c1_8, %c0_9] : memref<2x32xf32, #tpu.memory_space<vmem>>, vector<1x32xf32>
    %12 = vector.broadcast %11 : vector<1x32xf32> to vector<64x32xf32>
    %13 = arith.addf %10, %12 : vector<64x32xf32>
    %14 = arith.addf %13, %6 : vector<64x32xf32>
    %cst = arith.constant 0.000000e+00 : f32
    %15 = vector.broadcast %cst : f32 to vector<64x32xf32>
    %16 = arith.maximumf %14, %15 : vector<64x32xf32>
    %c0_10 = arith.constant 0 : index
    %c0_11 = arith.constant 0 : index
    %17 = vector.load %arg5[%c0_10, %c0_11] : memref<64x32xf32, #tpu.memory_space<vmem>>, vector<64x32xf32>
    tpu.vector_store %arg5[%c0_10, %c0_11], %16 {strides = array<i32>} : memref<64x32xf32, #tpu.memory_space<vmem>>, vector<64x32xf32>,
    return
  }
  func.func @transform_0(%arg0: i32) -> (i32, i32) {
    %c0_i32 = arith.constant 0 : i32
    %c0_i32_0 = arith.constant 0 : i32
    return %arg0, %c0_i32 : i32, i32
  }
  func.func @transform_1(%arg0: i32) -> (i32, i32) {
    %c0_i32 = arith.constant 0 : i32
    %c0_i32_0 = arith.constant 0 : i32
    return %arg0, %c0_i32 : i32, i32
  }
  func.func @transform_2(%arg0: i32) -> (i32, i32) {
    %c0_i32 = arith.constant 0 : i32
    %c0_i32_0 = arith.constant 0 : i32
    %c0_i32_1 = arith.constant 0 : i32
    return %c0_i32, %c0_i32_0 : i32, i32
  }
  func.func @transform_3(%arg0: i32) -> (i32, i32) {
    %c0_i32 = arith.constant 0 : i32
    %c0_i32_0 = arith.constant 0 : i32
    %c0_i32_1 = arith.constant 0 : i32
    return %c0_i32, %c0_i32_0 : i32, i32
  }
  func.func @transform_4(%arg0: i32) -> (i32, i32) {
    %c0_i32 = arith.constant 0 : i32
    %c0_i32_0 = arith.constant 0 : i32
    return %arg0, %c0_i32 : i32, i32
  }
}

</mosaic_0001>

<bundles_post_ra>
// kernel: bottleneck_forward.6
= control target key start
LH: loop header
LB: loop body
LE: loop exit
PB: predicated region body
PF: predicated region fallthrough
CT: control target
= control target key end

     0   :  { %s571_s15 = smov 0   ;;  %s641_s0 = inlined_call_operand.vmem [shape: f32[128,8], index: 0, kind: input, shape index: {}]   ;;  %s642_s1 = inlined_call_operand.vmem [shape: f32[2,8], index: 1, kind: input, shape index: {}]   ;;  %s643_s2 = inlined_call_operand.vmem [shape: bf16[8,32], index: 2, kind: input, shape index: {}]   ;;  %s644_s3 = inlined_call_operand.vmem [shape: f32[128,32], index: 3, kind: output, shape index: {0}]   ;;  %s645_s4 = inlined_call_operand.vmem [shape: f32[2,8,32], index: 4, kind: output, shape index: {1}]  }
   0x1 LB: > { %s577_s16 = sadd.s32 4294967295, %s544_s15   ;;  %p497_p0 = scmp.ge.s32.totalorder %s544_s15, 1  ;;  %s544_s15 = sphi %s571_s15, %s15_s15  }
   0x2   : > { %p166_p1 = scmp.lt.s32.totalorder %s544_s15, 3 }
   0x4   : > { %p167_p2 = pnand %p497_p0, %p166_p1 }
   0x5   : > { %v259_v0 = vld [vmem:[%s643_s2] sm:$0xf] (!%p167_p2)  ;;  %vm273_vm0 = vcmask (!%p167_p2), 1043456   ;;  %s498_s19 = sshll.u32 (!%p167_p2), %s577_s16, 3  ;;  %vm260_vm1 = vcmask (!%p167_p2), 64512   ;;  %vm342_vm2 = vcmask (!%p167_p2), 261120  }
   0x6   : > { %170 = sbr.rel (%p167_p2) target bundleno = 273 (0x111), region = 32  ;;  %528 = vmatprep.subr.msk.bf16.mxu0 (!%p167_p2), %vm273_vm0, %v259_v0  ;;  %v275_v1 = vsel (!%p167_p2), %vm273_vm0, %v259_v0, 0  ;;  %p197_p3 = scmp.lt.s32.totalorder (!%p167_p2), %s498_s19, 15  ;;  %529 = vmatprep.subr.msk.bf16.mxu1 (!%p167_p2), %vm273_vm0, %v259_v0  ;;  %v503_v2 = vld [vmem:[%s642_s1] ss:$0 sm:$0xff] (!%p167_p2)  ;;  %vm401_vm3 = vcmask (!%p167_p2), 1040384  }
   0x7   : > { %517 = vmatpush3.bf16.msra.mxu0 (!%p167_p2), %v275_v1  ;;  %527 = vmatpush3.bf16.msra.mxu1 (!%p167_p2), %v275_v1  ;;  %v504_v3 = vld [vmem:[%s642_s1 + $0x1] ss:$0 sm:$0xff] (!%p167_p2)  ;;  %p208_p4 = scmp.lt.s32.totalorder (!%p167_p2), %s577_s16, 1  ;;  %vm403_vm4 = vcmask (!%p167_p2), 1041408  }
   0xd   : > { %s647_s19 = smov (!%p197_p3, %s498_s19), 15  ;;  %s649_s16 = smov (!%p208_p4, %s577_s16), 1 }
   0xe   : > { %s499_s20 = sshll.u32 %s647_s19, 3  ;;  %s502_s5 = sshll.u32 %s649_s16, 3 }
   0xf   : > { %s200_s25 = scalar_lea.vmem %s641_s0, %s499_s20  ;;  %s206_s30 = scalar_lea.vmem %s644_s3, %s499_s20 }
  0x10   : > { %v213_v4 = vld [vmem:[%s200_s25] sm:$0xff]  ;;  %v214_v5 = vld [vmem:[%s200_s25 + $0x8] sm:$0xff]  ;;  %v215_v6 = vld [vmem:[%s200_s25 + $0x10] sm:$0xff]  ;;  %s211_s8 = scalar_lea.vmem %s645_s4, %s502_s5 }
  0x11   : > { %v226_v7 = vmul.f32 %v503_v2, %v213_v4  ;;  %v227_v8 = vmul.f32 %v503_v2, %v214_v5  ;;  %v216_v9 = vld [vmem:[%s200_s25 + $0x18] sm:$0xff]  ;;  %v228_v10 = vmul.f32 %v503_v2, %v215_v6  ;;  %v217_v11 = vld [vmem:[%s200_s25 + $0x20] sm:$0xff]  ;;  %v218_v12 = vld [vmem:[%s200_s25 + $0x28] sm:$0xff] }
  0x12   : > { %v229_v13 = vmul.f32 %v503_v2, %v216_v9  ;;  %v230_v14 = vmul.f32 %v503_v2, %v217_v11  ;;  %v231_v15 = vmul.f32 %v503_v2, %v218_v12  ;;  %v219_v16 = vld [vmem:[%s200_s25 + $0x30] sm:$0xff]  ;;  %v220_v17 = vld [vmem:[%s200_s25 + $0x38] sm:$0xff] }
  0x13   : > { %v239_v18 = vadd.f32 %v504_v3, %v226_v7  ;;  %v240_v19 = vadd.f32 %v504_v3, %v227_v8  ;;  %v241_v20 = vadd.f32 %v504_v3, %v228_v10  ;;  %v232_v21 = vmul.f32 %v503_v2, %v219_v16 }
  0x14   : > { %v242_v22 = vadd.f32 %v504_v3, %v229_v13  ;;  %v243_v23 = vadd.f32 %v504_v3, %v230_v14  ;;  %v244_v24 = vadd.f32 %v504_v3, %v231_v15  ;;  %v233_v25 = vmul.f32 %v503_v2, %v220_v17 }
  0x15   : > { %v247_v26 = vmax.f32 %v239_v18, 0.0  ;;  %v248_v27 = vmax.f32 %v240_v19, 0.0  ;;  %v249_v28 = vmax.f32 %v241_v20, 0.0  ;;  %v245_v29 = vadd.f32 %v504_v3, %v232_v21 }
  0x16   : > { %v250_v30 = vmax.f32 %v242_v22, 0.0  ;;  %v251_v31 = vmax.f32 %v243_v23, 0.0  ;;  %v252_v32 = vmax.f32 %v244_v24, 0.0  ;;  %v246_v33 = vadd.f32 %v504_v3, %v233_v25 }
  0x17   : > { %v255_v34 = vpack.c.bf16 %v248_v27, %v247_v26  ;;  %v253_v35 = vmax.f32 %v245_v29, 0.0 }
  0x18   : > { %v256_v36 = vpack.c.bf16 %v250_v30, %v249_v28  ;;  %v257_v37 = vpack.c.bf16 %v252_v32, %v251_v31  ;;  %v254_v38 = vmax.f32 %v246_v33, 0.0 }
  0x19   : > { %518 = vmatprep.mubr.msk.bf16.mxu0 %vm260_vm1, %v255_v34 }
  0x1a   : > { %519 = vmatmul.mubr.msk.bf16.vlgmr.msra.gmra.mrb[0].mxu0 %vm260_vm1, %v256_v36  ;;  %522 = vmatprep.mubr.msk.bf16.mxu1 %vm260_vm1, %v257_v37  ;;  %v258_v39 = vpack.c.bf16 %v254_v38, %v253_v35 }
  0x1c   : > { %523 = vmatmul.mubr.msk.bf16.vlgmr.msra.gmra.mrb[0].mxu1 %vm260_vm1, %v258_v39 }
  0xed   : > { %v520_v40 = vpop.f32.mrb[0].mxu0 }
  0xee   : > { %345 = vst.msk [vmem:[%s206_s30 + $0x10] sm:$0xff] %vm342_vm2, %v520_v40  ;;  %v311_v41 = vpop.f32.mrb[1].mxu0  ;;  %v374_v47 = vmul.f32 %v520_v40, %v520_v40  ;;  %v354_v52 = vsel %vm342_vm2, %v520_v40, 0.0 }
  0xef   : > { %343 = vst.msk [vmem:[%s206_s30] sm:$0xff] %vm342_vm2, %v311_v41  ;;  %v372_v42 = vmul.f32 %v311_v41, %v311_v41  ;;  %v521_v43 = vpop.f32.mrb[2].mxu0  ;;  %v524_v44 = vpop.f32.mrb[0].mxu1  ;;  %v351_v48 = vsel %vm342_vm2, %v311_v41, 0.0 }
  0xf0   : > { %346 = vst.msk [vmem:[%s206_s30 + $0x18] sm:$0xff] %vm342_vm2, %v521_v43  ;;  %v314_v45 = vpop.f32.mrb[3].mxu0  ;;  %349 = vst.msk [vmem:[%s206_s30 + $0x30] sm:$0xff] %vm342_vm2, %v524_v44  ;;  %v327_v46 = vpop.f32.mrb[1].mxu1  ;;  %v375_v56 = vmul.f32 %v521_v43, %v521_v43  ;;  %v383_v61 = vsel %vm342_vm2, %v374_v47, 0.0  ;;  %v356_v62 = vsel %vm342_vm2, %v521_v43, 0.0  ;;  %v378_v7 = vmul.f32 %v524_v44, %v524_v44 }
  0xf1   : > { %344 = vst.msk [vmem:[%s206_s30 + $0x8] sm:$0xff] %vm342_vm2, %v314_v45  ;;  %v352_v49 = vsel %vm342_vm2, %v314_v45, 0.0  ;;  %v373_v50 = vmul.f32 %v314_v45, %v314_v45  ;;  %347 = vst.msk [vmem:[%s206_s30 + $0x20] sm:$0xff] %vm342_vm2, %v327_v46  ;;  %v525_v51 = vpop.f32.mrb[2].mxu1  ;;  %v380_v55 = vsel %vm342_vm2, %v372_v42, 0.0  ;;  %v376_v58 = vmul.f32 %v327_v46, %v327_v46 }
  0xf2   : > { %v353_v53 = vadd.f32 %v352_v49, %v351_v48  ;;  %350 = vst.msk [vmem:[%s206_s30 + $0x38] sm:$0xff] %vm342_vm2, %v525_v51  ;;  %v330_v54 = vpop.f32.mrb[3].mxu1  ;;  %v358_v63 = vsel %vm342_vm2, %v327_v46, 0.0  ;;  %v385_v2 = vsel %vm342_vm2, %v375_v56, 0.0  ;;  %v362_v11 = vsel %vm342_vm2, %v524_v44, 0.0 }
  0xf3   : > { %v381_v57 = vsel %vm342_vm2, %v373_v50, 0.0  ;;  %348 = vst.msk [vmem:[%s206_s30 + $0x28] sm:$0xff] %vm342_vm2, %v330_v54  ;;  %v387_v3 = vsel %vm342_vm2, %v376_v58, 0.0  ;;  %v377_v4 = vmul.f32 %v330_v54, %v330_v54  ;;  %v360_v8 = vsel %vm342_vm2, %v330_v54, 0.0 }
  0xf4   : > { %v355_v59 = vadd.f32 %v354_v52, %v353_v53  ;;  %v382_v60 = vadd.f32 %v381_v57, %v380_v55  ;;  %v379_v12 = vmul.f32 %v525_v51, %v525_v51  ;;  %v391_v16 = vsel %vm342_vm2, %v378_v7, 0.0 }
  0xf5   : > { %v389_v13 = vsel %vm342_vm2, %v377_v4, 0.0  ;;  %v364_v17 = vsel %vm342_vm2, %v525_v51, 0.0 }
  0xf6   : > { %v384_v0 = vadd.f32 %v383_v61, %v382_v60  ;;  %v357_v1 = vadd.f32 %v356_v62, %v355_v59  ;;  %v393_v20 = vsel %vm342_vm2, %v379_v12, 0.0 }
  0xf8   : > { %v359_v5 = vadd.f32 %v358_v63, %v357_v1  ;;  %v386_v6 = vadd.f32 %v385_v2, %v384_v0 }
  0xfa   : > { %v388_v9 = vadd.f32 %v387_v3, %v386_v6  ;;  %v361_v10 = vadd.f32 %v360_v8, %v359_v5 }
  0xfc   : > { %v363_v14 = vadd.f32 %v362_v11, %v361_v10  ;;  %v390_v15 = vadd.f32 %v389_v13, %v388_v9 }
  0xfe   : > { %v365_v18 = vadd.f32 %v364_v17, %v363_v14  ;;  %v392_v19 = vadd.f32 %v391_v16, %v390_v15 }
 0x100   : > { %v366_v21 = vrot.slane %v365_v18, 4  ;;  %v394_v22 = vadd.f32 %v393_v20, %v392_v19 }
 0x102   : > { %v367_v23 = vadd.f32 %v366_v21, %v365_v18  ;;  %v395_v24 = vrot.slane %v394_v22, 4 }
 0x104   : > { %v368_v25 = vrot.slane %v367_v23, 2  ;;  %v396_v26 = vadd.f32 %v395_v24, %v394_v22 }
 0x106   : > { %v369_v27 = vadd.f32 %v368_v25, %v367_v23  ;;  %v397_v28 = vrot.slane %v396_v26, 2 }
 0x108   : > { %v370_v29 = vrot.slane %v369_v27, 1  ;;  %v398_v30 = vadd.f32 %v397_v28, %v396_v26 }
 0x10a   : > { %v399_v31 = vrot.slane %v398_v30, 1  ;;  %v371_v32 = vadd.f32 %v370_v29, %v369_v27 }
 0x10c   : > { %v400_v33 = vadd.f32 %v399_v31, %v398_v30 }
 0x10e   : > { %v402_v34 = vsel %vm401_vm3, %v371_v32, %v400_v33 }
 0x10f   : > { %v404_v35 = vsel %vm403_vm4, %v402_v34, 0.0 }
 0x110   : > { %405 = vst.msk [vmem:[%s211_s8] sm:$0xff] %vm342_vm2, %v404_v35 }
 0x111 PF: > { %s15_s15 = sadd.s32 1, %s544_s15  }
 0x112   : > { %p12_p5 = scmp.ge.s32.totalorder %s15_s15, 4  }
 0x114   :  { %14 = sbr.rel (!%p12_p5) target bundleno = 1 (0x1), region = 74 }

// kernel: bottleneck_forward.7
= control target key start
LH: loop header
LB: loop body
LE: loop exit
PB: predicated region body
PF: predicated region fallthrough
CT: control target
= control target key end

     0   :  { %9 = vsyncpa [#allocation3], 0  ;;  %s746_s0 = inlined_call_operand.vmem [shape: f32[128,32], index: 0, kind: input, shape index: {}]   ;;  %s747_s1 = inlined_call_operand.vmem [shape: f32[128,32], index: 1, kind: input, shape index: {}]   ;;  %s748_s2 = inlined_call_operand.vmem [shape: f32[2,32], index: 2, kind: input, shape index: {}]   ;;  %s749_s3 = inlined_call_operand.vmem [shape: f32[2,32], index: 3, kind: input, shape index: {}]   ;;  %s750_s4 = inlined_call_operand.hbm [shape: f32[128,32], index: 4, kind: output, shape index: {}]  }
   0x1   :  { %11 = vsyncpa [#allocation3 + $0x1], 0  ;;  %s554_s15 = smov 0   ;;  %s556_s16 = smov 0  }
   0x2   :  { %s558_s17 = smov 0   ;;  %s560_s18 = smov 0  }
   0x3 LB: > { %s575_s19 = sadd.s32 4294967295, %s524_s18   ;;  %s402_s20 = sadd.s32 4294967294, %s524_s18   ;;  %s524_s18 = sphi %s560_s18, %s756_s18   ;;  %s520_s17 = sphi %s558_s17, %s755_s17   ;;  %s516_s16 = sphi %s556_s16, %s754_s16   ;;  %s512_s15 = sphi %s554_s15, %s753_s15  }
   0x4   : > { %s579_s21 = sadd.s32 1, %s524_s18   ;;  %s118_s22 = sadd.s32 1, %s520_s17 }
   0x5   : > { %s115_s23 = ssub.s32 %s524_s18, %s579_s21  ;;  %p128_p0 = scmp.ne.s32.totalorder %s520_s17, %s516_s16 }
   0x6   : > { %p116_p1 = scmp.eq.s32.totalorder %s115_s23, 0  ;;  %p129_p2 = scmp.eq.s32.totalorder %s575_s19, 1 }
   0x7   : > { %p134_p3 = scmp.ne.s32.totalorder %s516_s16, %s512_s15  ;;  %p135_p4 = scmp.eq.s32.totalorder %s402_s20, 1 }
   0x8   : > { %s590_s24 = scalar_select %p116_p1, %s520_s17, %s118_s22  }
   0x9   : > { %p592_p5 = por %p129_p2, %p128_p0  ;;  %p596_p6 = por %p135_p4, %p134_p3 }
   0xa   : > { %p405_p7 = scmp.ge.s32.totalorder %s524_s18, 1  ;;  %p177_p8 = scmp.lt.s32.totalorder %s524_s18, 3 }
   0xc   : > { %p178_p9 = pnand %p405_p7, %p177_p8 }
   0xd   : > { %s407_s27 = sshll.u32 (!%p178_p9), %s575_s19, 3  ;;  %v606_v0 = vld [vmem:[%s749_s3] ss:$0 sm:$0xff] (!%p178_p9)  ;;  %v626_v2 = vld [vmem:[%s749_s3 + $0x1] ss:$0 sm:$0xff] (!%p178_p9)  ;;  %s205_s23 = sand.u32 (!%p178_p9), 1, %s516_s16  }
   0xe   : > { %181 = sbr.rel (%p178_p9) target bundleno = 57 (0x39), region = 36  ;;  %p209_p10 = scmp.lt.s32.totalorder (!%p178_p9), %s407_s27, 15  ;;  %v611_v1 = vld [vmem:[%s748_s2] ss:$0 sm:$0xff] (!%p178_p9)  ;;  %v631_v3 = vld [vmem:[%s748_s2 + $0x1] ss:$0 sm:$0xff] (!%p178_p9) }
   0xf   : > { %vm305_vm0 = vcmask (!%p178_p9), 261120   ;;  %s420_s30 = sshll.u32 (!%p178_p9), %s575_s19, 10  ;;  %s705_s19 = scalar_lea.sflag (!%p178_p9), [#allocation3], %s205_s23 }
  0x10   : > { %s699_s7 = scalar_lea.hbm (!%p178_p9), %s750_s4, %s420_s30 }
  0x15   : > { %s758_s27 = smov (!%p209_p10, %s407_s27), 15 }
  0x16   : > { %s408_s28 = sshll.u32 %s758_s27, 3  ;;  %s651_s27 = sshll.u32 %s205_s23, 6 }
  0x17   : > { %s616_s9 = scalar_lea.vmem %s746_s0, %s408_s28  ;;  %s621_s12 = scalar_lea.vmem %s747_s1, %s408_s28 }
  0x18   : > { %v221_v4 = vld [vmem:[%s621_s12] sm:$0xff]  ;;  %v222_v6 = vld [vmem:[%s621_s12 + $0x8] sm:$0xff]  ;;  %v223_v11 = vld [vmem:[%s621_s12 + $0x10] sm:$0xff]  ;;  %s207_s28 = scalar_lea.vmem [#allocation2], %s651_s27 }
  0x19   : > { %v255_v5 = vld [vmem:[%s616_s9] sm:$0xff]  ;;  %v234_v7 = vmul.f32 %v606_v0, %v221_v4  ;;  %v235_v9 = vmul.f32 %v606_v0, %v222_v6  ;;  %v256_v10 = vld [vmem:[%s616_s9 + $0x8] sm:$0xff]  ;;  %v257_v12 = vld [vmem:[%s616_s9 + $0x10] sm:$0xff]  ;;  %v236_v14 = vmul.f32 %v606_v0, %v223_v11  ;;  %s328_s29 = sshll.u32 %s207_s28, 4  ;;  %s693_s29 = int_to_ptr.vmem [resolvable:$true] %s328_s29 }
  0x1a   : > { %v268_v8 = vmul.f32 %v611_v1, %v255_v5  ;;  %v269_v13 = vmul.f32 %v611_v1, %v256_v10  ;;  %v270_v15 = vmul.f32 %v611_v1, %v257_v12  ;;  %v224_v16 = vld [vmem:[%s621_s12 + $0x18] sm:$0xff]  ;;  %v225_v18 = vld [vmem:[%s621_s12 + $0x20] sm:$0xff]  ;;  %v226_v24 = vld [vmem:[%s621_s12 + $0x28] sm:$0xff]  ;;  %s462_s8 = scalar_lea.vmem %s693_s29, 1024 }
  0x1b   : > { %v258_v17 = vld [vmem:[%s616_s9 + $0x18] sm:$0xff]  ;;  %v247_v19 = vadd.f32 %v626_v2, %v234_v7  ;;  %v248_v21 = vadd.f32 %v626_v2, %v235_v9  ;;  %v237_v22 = vmul.f32 %v606_v0, %v224_v16  ;;  %v259_v23 = vld [vmem:[%s616_s9 + $0x20] sm:$0xff]  ;;  %v249_v26 = vadd.f32 %v626_v2, %v236_v14  ;;  %v260_v29 = vld [vmem:[%s616_s9 + $0x28] sm:$0xff]  ;;  %p463_p11 = scmp.ne.s32.totalorder %s693_s29, %s462_s8 }
  0x1c   : > { %v281_v20 = vadd.f32 %v631_v3, %v268_v8  ;;  %v282_v25 = vadd.f32 %v631_v3, %v269_v13  ;;  %v283_v27 = vadd.f32 %v631_v3, %v270_v15  ;;  %v271_v28 = vmul.f32 %v611_v1, %v258_v17  ;;  %v227_v38 = vld [vmem:[%s621_s12 + $0x30] sm:$0xff]  ;;  %v228_v44 = vld [vmem:[%s621_s12 + $0x38] sm:$0xff] }
  0x1d   : > { %v250_v31 = vadd.f32 %v626_v2, %v237_v22  ;;  %v238_v32 = vmul.f32 %v606_v0, %v225_v18  ;;  %v272_v33 = vmul.f32 %v611_v1, %v259_v23  ;;  %v239_v37 = vmul.f32 %v606_v0, %v226_v24  ;;  %v261_v39 = vld [vmem:[%s616_s9 + $0x30] sm:$0xff]  ;;  %v262_v45 = vld [vmem:[%s616_s9 + $0x38] sm:$0xff]  ;;  %p464_p12 = pnand %p463_p11, %p592_p5  ;;  %s526_s9 = smov [#allocation2]  }
  0x1e   : > { %v289_v30 = vadd.f32 %v281_v20, %v247_v19  ;;  %v290_v34 = vadd.f32 %v282_v25, %v248_v21  ;;  %v291_v35 = vadd.f32 %v283_v27, %v249_v26  ;;  %v284_v36 = vadd.f32 %v631_v3, %v271_v28  ;;  %s466_s10 = sshll.u32 %s526_s9, 4  ;;  %s467_s10 = int_to_ptr.vmem [resolvable:$false] %s466_s10 }
  0x1f   : > { %v251_v41 = vadd.f32 %v626_v2, %v238_v32  ;;  %v285_v42 = vadd.f32 %v631_v3, %v272_v33  ;;  %v273_v43 = vmul.f32 %v611_v1, %v260_v29  ;;  %v252_v49 = vadd.f32 %v626_v2, %v239_v37  ;;  %p465_p13 = pneg %p464_p12  ;;  %s468_s11 = scalar_lea.vmem %s467_s10, 2048 }
  0x20   : > { %v297_v40 = vmax.f32 %v289_v30, 0.0  ;;  %v298_v46 = vmax.f32 %v290_v34, 0.0  ;;  %v299_v47 = vmax.f32 %v291_v35, 0.0  ;;  %v292_v48 = vadd.f32 %v284_v36, %v250_v31  ;;  %p469_p0 = scmp.lt.s32.totalorder %s693_s29, %s467_s10  ;;  %p470_p1 = scmp.lt.s32.totalorder %s468_s11, %s462_s8 }
  0x21   : > { %v293_v50 = vadd.f32 %v285_v42, %v251_v41  ;;  %v286_v51 = vadd.f32 %v631_v3, %v273_v43  ;;  %v240_v52 = vmul.f32 %v606_v0, %v227_v38  ;;  %v274_v53 = vmul.f32 %v611_v1, %v261_v39 }
  0x22   : > { %306 = vst.msk [vmem:[%s207_s28] sm:$0xff] %vm305_vm0, %v297_v40  ;;  %307 = vst.msk [vmem:[%s207_s28 + $0x8] sm:$0xff] %vm305_vm0, %v298_v46  ;;  %v300_v54 = vmax.f32 %v292_v48, 0.0  ;;  %v241_v55 = vmul.f32 %v606_v0, %v228_v44  ;;  %v275_v56 = vmul.f32 %v611_v1, %v262_v45  ;;  %p471_p2 = por %p470_p1, %p469_p0 }
  0x23   : > { %308 = vst.msk [vmem:[%s207_s28 + $0x10] sm:$0xff] %vm305_vm0, %v299_v47  ;;  %v301_v57 = vmax.f32 %v293_v50, 0.0  ;;  %v294_v58 = vadd.f32 %v286_v51, %v252_v49  ;;  %v253_v59 = vadd.f32 %v626_v2, %v240_v52  ;;  %v287_v60 = vadd.f32 %v631_v3, %v274_v53 }
  0x24   : > { %309 = vst.msk [vmem:[%s207_s28 + $0x18] sm:$0xff] %vm305_vm0, %v300_v54  ;;  %v254_v61 = vadd.f32 %v626_v2, %v241_v55  ;;  %v288_v62 = vadd.f32 %v631_v3, %v275_v56  ;;  %p472_p3 = pnand %p471_p2, %p465_p13 }
  0x25   : > { %310 = vst.msk [vmem:[%s207_s28 + $0x20] sm:$0xff] %vm305_vm0, %v301_v57  ;;  %v302_v63 = vmax.f32 %v294_v58, 0.0  ;;  %v295_v0 = vadd.f32 %v287_v60, %v253_v59 }
  0x26   : > { %v296_v1 = vadd.f32 %v288_v62, %v254_v61 }
  0x27   : > { %311 = vst.msk [vmem:[%s207_s28 + $0x28] sm:$0xff] %vm305_vm0, %v302_v63  ;;  %v303_v4 = vmax.f32 %v295_v0, 0.0 }
  0x28   : > { %v304_v2 = vmax.f32 %v296_v1, 0.0 }
  0x29   : > { %312 = vst.msk [vmem:[%s207_s28 + $0x30] sm:$0xff] %vm305_vm0, %v303_v4 }
  0x2a   : > { %313 = vst.msk [vmem:[%s207_s28 + $0x38] sm:$0xff] %vm305_vm0, %v304_v2 }
  0x2b   : > { %475 = shalt.err (!%p472_p3)
}
  0x2c   : > { %s476_s12 = scalar_lea.hbm %s699_s7, 1024  ;;  %s480_s20 = scalar_lea.hbm %s750_s4, 2048 }
  0x2d   : > { %p477_p4 = scmp.ne.s32.totalorder %s699_s7, %s476_s12  ;;  %p481_p9 = scmp.lt.u32.totalorder %s699_s7, %s750_s4 }
  0x2e   : > { %p482_p10 = scmp.lt.u32.totalorder %s480_s20, %s476_s12  ;;  %p484_p12 = scmp.lt.u32.totalorder %s476_s12, %s699_s7 }
  0x2f   : > { %p478_p7 = pnand %p477_p4, %p592_p5 }
  0x30   : > { %p483_p11 = por %p482_p10, %p481_p9 }
  0x31   : > { %p479_p8 = pneg %p478_p7 }
  0x32   : > { %p485_p13 = por %p484_p12, %p483_p11 }
  0x34   : > { %p486_p0 = pnand %p485_p13, %p479_p8 }
  0x36   : > { %489 = shalt.err (!%p486_p0)
}
  0x37   : > { %s527_s27 = smov 128   ;;  %s528_s28 = smov 8  }
  0x38   : > { %421 = dma.vmem_to_hbm [thread:$0]  (%p592_p5), %s693_s29, 1024, %s699_s7, %s705_s19, %s527_s27, %s527_s27, %s528_s28  }
  0x39 PF: > { %p427_p1 = scmp.ge.s32.totalorder %s524_s18, 2  ;;  %s343_s30 = sand.u32 1, %s512_s15  }
  0x3a   : > { %s344_s5 = scalar_lea.sflag [#allocation3], %s343_s30 }
  0x3b   : > { %p424_p2 = pnand %p427_p1, %p596_p6 }
  0x3d   : > { %507 = dma.done.wait (!%p424_p2), %s344_s5, 1024  }
  0x3e   : > { %509 = vsyncadd (!%p424_p2), %s344_s5, 4294966272  ;;  %p14_p3 = scmp.ge.s32.totalorder %s579_s21, 4   ;;  %s753_s15 = smov %s516_s16 }
  0x3f   : > { %s754_s16 = smov %s520_s17  ;;  %s755_s17 = smov %s590_s24 }
  0x40   : > { %s756_s18 = smov %s579_s21  ;;  %16 = sbr.rel (!%p14_p3) target bundleno = 3 (0x3), region = 74 }
  0x47   :  { %349 = vsyncpa [#allocation3], 1 }
  0x48   :  { %351 = vsyncpa [#allocation3 + $0x1], 1 }

// kernel: bottleneck_forward.4
= control target key start
LH: loop header
LB: loop body
LE: loop exit
PB: predicated region body
PF: predicated region fallthrough
CT: control target
= control target key end

     0   :  { %s750_s18 = smov 0   ;;  %s875_s0 = inlined_call_operand.vmem [shape: f32[128,8], index: 0, kind: input, shape index: {}]   ;;  %s876_s1 = inlined_call_operand.vmem [shape: bf16[8,40], index: 1, kind: input, shape index: {}]   ;;  %s877_s2 = inlined_call_operand.vmem [shape: f32[128,8], index: 2, kind: output, shape index: {0}]   ;;  %s878_s3 = inlined_call_operand.vmem [shape: f32[128,32], index: 3, kind: output, shape index: {1}]   ;;  %s879_s4 = inlined_call_operand.vmem [shape: f32[2,8,8], index: 4, kind: output, shape index: {2}]   ;;  %s880_s5 = inlined_call_operand.vmem [shape: f32[2,8,32], index: 5, kind: output, shape index: {3}]  }
   0x1 LB: > { %s756_s19 = sadd.s32 4294967295, %s717_s18   ;;  %p668_p0 = scmp.ge.s32.totalorder %s717_s18, 1  ;;  %s717_s18 = sphi %s750_s18, %s16_s18  }
   0x2   : > { %p195_p1 = scmp.lt.s32.totalorder %s717_s18, 3 }
   0x4   : > { %p196_p2 = pnand %p668_p0, %p195_p1 }
   0x5   : > { %v275_v0 = vld [vmem:[%s876_s1] sm:$0xf] (!%p196_p2)  ;;  %vm289_vm0 = vcmask (!%p196_p2), 1043456   ;;  %s669_s22 = sshll.u32 (!%p196_p2), %s756_s19, 3  ;;  %vm276_vm1 = vcmask (!%p196_p2), 64512   ;;  %vm462_vm2 = vcmask (!%p196_p2), 326720  }
   0x6   : > { %199 = sbr.rel (%p196_p2) target bundleno = 382 (0x17e), region = 28  ;;  %700 = vmatprep.subr.msk.bf16.mxu0 (!%p196_p2), %vm289_vm0, %v275_v0  ;;  %701 = vmatprep.subr.msk.bf16.mxu1 (!%p196_p2), %vm289_vm0, %v275_v0  ;;  %v291_v1 = vsel (!%p196_p2), %vm289_vm0, %v275_v0, 0  ;;  %p237_p3 = scmp.lt.s32.totalorder (!%p196_p2), %s669_s22, 15  ;;  %vm416_vm3 = vcmask (!%p196_p2), 1040384   ;;  %vm418_vm4 = vcmask (!%p196_p2), 1041408   ;;  %vm453_vm5 = vcmask (!%p196_p2), 261120  }
   0x7   : > { %689 = vmatpush3.bf16.msra.mxu0 (!%p196_p2), %v291_v1  ;;  %699 = vmatpush3.bf16.msra.mxu1 (!%p196_p2), %v291_v1  ;;  %s719_s30 = smov (!%p196_p2), 120   ;;  %p254_p4 = scmp.lt.s32.totalorder (!%p196_p2), %s756_s19, 1 }
   0xd   : > { %s882_s22 = smov (!%p237_p3, %s669_s22), 15  ;;  %s884_s19 = smov (!%p254_p4, %s756_s19), 1 }
   0xe   : > { %s764_s23 = sshll.u32 %s882_s22, 3  ;;  %s675_s6 = sshll.u32 %s884_s19, 3 }
   0xf   : > { %s240_s26 = scalar_lea.vmem %s875_s0, %s764_s23  ;;  %s246_s29 = scalar_lea.vmem %s877_s2, %s764_s23 }
  0x10   : > { %v263_v2 = vld [vmem:[%s240_s26] sm:$0xff]  ;;  %v264_v3 = vld [vmem:[%s240_s26 + $0x8] sm:$0xff]  ;;  %v265_v7 = vld [vmem:[%s240_s26 + $0x10] sm:$0xff]  ;;  %s257_s9 = scalar_lea.vmem %s879_s4, %s675_s6  ;;  %s252_s12 = scalar_lea.vmem %s878_s3, %s764_s23 }
  0x11   : > { %v267_v4 = vld [vmem:[%s240_s26 + $0x20] sm:$0xff]  ;;  %v271_v5 = vpack.c.bf16 %v264_v3, %v263_v2  ;;  %v268_v6 = vld [vmem:[%s240_s26 + $0x28] sm:$0xff]  ;;  %v266_v8 = vld [vmem:[%s240_s26 + $0x18] sm:$0xff]  ;;  %s261_s15 = scalar_lea.vmem %s880_s5, %s675_s6 }
  0x12   : > { %v273_v9 = vpack.c.bf16 %v268_v6, %v267_v4  ;;  %v272_v10 = vpack.c.bf16 %v266_v8, %v265_v7  ;;  %v269_v11 = vld [vmem:[%s240_s26 + $0x30] sm:$0xff]  ;;  %v270_v12 = vld [vmem:[%s240_s26 + $0x38] sm:$0xff] }
  0x13   : > { %690 = vmatprep.mubr.msk.bf16.mxu0 %vm276_vm1, %v271_v5  ;;  %v274_v13 = vpack.c.bf16 %v270_v12, %v269_v11 }
  0x14   : > { %694 = vmatprep.mubr.msk.bf16.mxu1 %vm276_vm1, %v273_v9  ;;  %691 = vmatmul.mubr.msk.bf16.vlgmr.msra.gmra.mrb[0].mxu0 %vm276_vm1, %v272_v10 }
  0x15   : > { %695 = vmatmul.mubr.msk.bf16.vlgmr.msra.gmra.mrb[0].mxu1 %vm276_vm1, %v274_v13 }
  0xe7   : > { %v692_v14 = vpop.f32.mrb[0].mxu0 }
  0xe8   : > { %360 = vst.msk [vmem:[%s246_s29 + $0x10] sm:$0xff] %vm276_vm1, %v692_v14  ;;  %v779_v15 = vpop.f32.mrb[0].mxu1  ;;  %433 = vrot.lane.b32.xlu1 %v692_v14, %s719_s30  ;;  %v327_v16 = vpop.f32.mrb[1].mxu0  ;;  %v369_v22 = vsel %vm276_vm1, %v692_v14, 0.0  ;;  %v389_v23 = vmul.f32 %v692_v14, %v692_v14  ;;  %v466_v24 = vsel %vm462_vm2, %v692_v14, 0.0 }
  0xe9   : > { %364 = vst.msk [vmem:[%s246_s29 + $0x30] sm:$0xff] %vm276_vm1, %v779_v15  ;;  %441 = vrot.lane.b32.xlu0 %v779_v15, %s719_s30  ;;  %358 = vst.msk [vmem:[%s246_s29] sm:$0xff] %vm276_vm1, %v327_v16  ;;  %v387_v17 = vmul.f32 %v327_v16, %v327_v16  ;;  %v693_v18 = vpop.f32.mrb[2].mxu0  ;;  %v343_v19 = vpop.f32.mrb[1].mxu1  ;;  %v366_v27 = vsel %vm276_vm1, %v327_v16, 0.0  ;;  %v463_v32 = vsel %vm462_vm2, %v327_v16, 0.0  ;;  %v393_v58 = vmul.f32 %v779_v15, %v779_v15 }
  0xea   : > { %361 = vst.msk [vmem:[%s246_s29 + $0x18] sm:$0xff] %vm276_vm1, %v693_v18  ;;  %v330_v20 = vpop.f32.mrb[3].mxu0  ;;  %362 = vst.msk [vmem:[%s246_s29 + $0x20] sm:$0xff] %vm276_vm1, %v343_v19  ;;  %v789_v21 = vpop.f32.mrb[2].mxu1  ;;  %v390_v26 = vmul.f32 %v693_v18, %v693_v18  ;;  %v398_v38 = vsel %vm276_vm1, %v389_v23, 0.0  ;;  %v487_v42 = vsel %vm462_vm2, %v389_v23, 0.0  ;;  %v391_v45 = vmul.f32 %v343_v19, %v343_v19 }
  0xeb   : > { %359 = vst.msk [vmem:[%s246_s29 + $0x8] sm:$0xff] %vm276_vm1, %v330_v20  ;;  %365 = vst.msk [vmem:[%s246_s29 + $0x38] sm:$0xff] %vm276_vm1, %v789_v21  ;;  %v346_v25 = vpop.f32.mrb[3].mxu1  ;;  %v367_v28 = vsel %vm276_vm1, %v330_v20, 0.0  ;;  %v388_v29 = vmul.f32 %v330_v20, %v330_v20  ;;  %v395_v31 = vsel %vm276_vm1, %v387_v17, 0.0  ;;  %v464_v33 = vsel %vm462_vm2, %v330_v20, 0.0 }
  0xec   : > { %435 = vrot.lane.b32.xlu1 %v693_v18, %s719_s30  ;;  %363 = vst.msk [vmem:[%s246_s29 + $0x28] sm:$0xff] %vm276_vm1, %v346_v25  ;;  %v368_v30 = vadd.f32 %v367_v28, %v366_v27  ;;  %v465_v35 = vadd.f32 %v464_v33, %v463_v32  ;;  %v484_v36 = vsel %vm462_vm2, %v387_v17, 0.0  ;;  %v371_v43 = vsel %vm276_vm1, %v693_v18, 0.0 }
  0xed   : > { %429 = vrot.lane.b32.xlu0 %v327_v16, %s719_s30  ;;  %v396_v34 = vsel %vm276_vm1, %v388_v29, 0.0  ;;  %v485_v37 = vsel %vm462_vm2, %v388_v29, 0.0  ;;  %v468_v46 = vsel %vm462_vm2, %v693_v18, 0.0  ;;  %v373_v49 = vsel %vm276_vm1, %v343_v19, 0.0 }
  0xee   : > { %v370_v39 = vadd.f32 %v369_v22, %v368_v30  ;;  %v397_v40 = vadd.f32 %v396_v34, %v395_v31  ;;  %v486_v41 = vadd.f32 %v485_v37, %v484_v36  ;;  %v467_v44 = vadd.f32 %v466_v24, %v465_v35 }
  0xef   : > { %v400_v50 = vsel %vm276_vm1, %v390_v26, 0.0  ;;  %v489_v51 = vsel %vm462_vm2, %v390_v26, 0.0  ;;  %v402_v52 = vsel %vm276_vm1, %v391_v45, 0.0  ;;  %v470_v54 = vsel %vm462_vm2, %v343_v19, 0.0 }
  0xf0   : > { %439 = vrot.lane.b32.xlu1 %v346_v25, %s719_s30  ;;  %v399_v47 = vadd.f32 %v398_v38, %v397_v40  ;;  %v488_v48 = vadd.f32 %v487_v42, %v486_v41  ;;  %v372_v53 = vadd.f32 %v371_v43, %v370_v39  ;;  %v491_v55 = vsel %vm462_vm2, %v391_v45, 0.0 }
  0xf1   : > { %437 = vrot.lane.b32.xlu0 %v343_v19, %s719_s30  ;;  %v392_v56 = vmul.f32 %v346_v25, %v346_v25  ;;  %v469_v60 = vadd.f32 %v468_v46, %v467_v44  ;;  %v394_v62 = vmul.f32 %v789_v21, %v789_v21  ;;  %v375_v63 = vsel %vm276_vm1, %v346_v25, 0.0 }
  0xf2   : > { %v401_v57 = vadd.f32 %v400_v50, %v399_v47  ;;  %v374_v59 = vadd.f32 %v373_v49, %v372_v53  ;;  %v490_v61 = vadd.f32 %v489_v51, %v488_v48  ;;  %v377_v5 = vsel %vm276_vm1, %v779_v15, 0.0 }
  0xf3   : > { %v404_v2 = vsel %vm276_vm1, %v392_v56, 0.0  ;;  %v471_v3 = vadd.f32 %v470_v54, %v469_v60  ;;  %v472_v7 = vsel %vm462_vm2, %v346_v25, 0.0  ;;  %v493_v8 = vsel %vm462_vm2, %v392_v56, 0.0 }
  0xf4   : > { %443 = vrot.lane.b32.xlu1 %v789_v21, %s719_s30  ;;  %v403_v0 = vadd.f32 %v402_v52, %v401_v57  ;;  %v376_v1 = vadd.f32 %v375_v63, %v374_v59  ;;  %v492_v4 = vadd.f32 %v491_v55, %v490_v61  ;;  %v406_v9 = vsel %vm276_vm1, %v393_v58, 0.0 }
  0xf5   : > { %431 = vrot.lane.b32.xlu0 %v330_v20, %s719_s30  ;;  %v473_v11 = vadd.f32 %v472_v7, %v471_v3  ;;  %v474_v13 = vsel %vm462_vm2, %v779_v15, 0.0  ;;  %v495_v14 = vsel %vm462_vm2, %v393_v58, 0.0  ;;  %v379_v16 = vsel %vm276_vm1, %v789_v21, 0.0 }
  0xf6   : > { %v405_v6 = vadd.f32 %v404_v2, %v403_v0  ;;  %v378_v10 = vadd.f32 %v377_v5, %v376_v1  ;;  %v494_v12 = vadd.f32 %v493_v8, %v492_v4  ;;  %v408_v18 = vsel %vm276_vm1, %v394_v62, 0.0 }
  0xf7   : > { %v475_v20 = vadd.f32 %v474_v13, %v473_v11  ;;  %v476_v23 = vsel %vm462_vm2, %v789_v21, 0.0  ;;  %v497_v24 = vsel %vm462_vm2, %v394_v62, 0.0 }
  0xf8   : > { %v407_v17 = vadd.f32 %v406_v9, %v405_v6  ;;  %v380_v19 = vadd.f32 %v379_v16, %v378_v10  ;;  %v496_v22 = vadd.f32 %v495_v14, %v494_v12 }
  0xf9   : > { %v477_v15 = vadd.f32 %v476_v23, %v475_v20 }
  0xfa   : > { %v409_v25 = vadd.f32 %v408_v18, %v407_v17  ;;  %v381_v26 = vrot.slane %v380_v19, 4  ;;  %v498_v27 = vadd.f32 %v497_v24, %v496_v22 }
  0xfb   : > { %v478_v30 = vrot.slane %v477_v15, 4 }
  0xfc   : > { %v410_v28 = vrot.slane %v409_v25, 4  ;;  %v382_v29 = vadd.f32 %v381_v26, %v380_v19  ;;  %v499_v31 = vrot.slane %v498_v27, 4 }
  0xfd   : > { %v479_v33 = vadd.f32 %v478_v30, %v477_v15 }
  0xfe   : > { %v411_v32 = vadd.f32 %v410_v28, %v409_v25  ;;  %v500_v34 = vadd.f32 %v499_v31, %v498_v27  ;;  %v383_v35 = vrot.slane %v382_v29, 2 }
  0xff   : > { %v480_v21 = vrot.slane %v479_v33, 2 }
 0x100   : > { %v412_v36 = vrot.slane %v411_v32, 2  ;;  %v501_v37 = vrot.slane %v500_v34, 2  ;;  %v384_v38 = vadd.f32 %v383_v35, %v382_v29 }
 0x101   : > { %v481_v40 = vadd.f32 %v480_v21, %v479_v33 }
 0x102   : > { %v413_v39 = vadd.f32 %v412_v36, %v411_v32  ;;  %v502_v41 = vadd.f32 %v501_v37, %v500_v34  ;;  %v385_v42 = vrot.slane %v384_v38, 1 }
 0x103   : > { %v482_v44 = vrot.slane %v481_v40, 1 }
 0x104   : > { %v414_v43 = vrot.slane %v413_v39, 1  ;;  %v503_v45 = vrot.slane %v502_v41, 1  ;;  %v386_v46 = vadd.f32 %v385_v42, %v384_v38 }
 0x105   : > { %v483_v48 = vadd.f32 %v482_v44, %v481_v40 }
 0x106   : > { %v415_v47 = vadd.f32 %v414_v43, %v413_v39  ;;  %v504_v49 = vadd.f32 %v503_v45, %v502_v41 }
 0x108   : > { %v417_v50 = vsel %vm416_vm3, %v386_v46, %v415_v47  ;;  %v505_v51 = vsel %vm416_vm3, %v483_v48, %v504_v49 }
 0x109   : > { %v419_v52 = vsel %vm418_vm4, %v417_v50, 0.0  ;;  %v506_v53 = vsel %vm418_vm4, %v505_v51, 0.0 }
 0x10a   : > { %420 = vst.msk [vmem:[%s257_s9] sm:$0xff] %vm276_vm1, %v419_v52  ;;  %508 = vrot.lane.b32.xlu0 %v506_v53, %s719_s30 }
 0x15a   : > { %v434_v54 = vpop.permute.xlu1 %433 }
 0x15b   : > { %v442_v55 = vpop.permute.xlu0 %441  ;;  %456 = vst.msk [vmem:[%s252_s12 + $0x10] sm:$0xff] %vm453_vm5, %v434_v54 }
 0x15c   : > { %460 = vst.msk [vmem:[%s252_s12 + $0x30] sm:$0xff] %vm453_vm5, %v442_v55 }
 0x15e   : > { %v436_v56 = vpop.permute.xlu1 %435 }
 0x15f   : > { %v430_v57 = vpop.permute.xlu0 %429  ;;  %457 = vst.msk [vmem:[%s252_s12 + $0x18] sm:$0xff] %vm453_vm5, %v436_v56 }
 0x160   : > { %454 = vst.msk [vmem:[%s252_s12] sm:$0xff] %vm453_vm5, %v430_v57 }
 0x162   : > { %v440_v58 = vpop.permute.xlu1 %439 }
 0x163   : > { %v438_v59 = vpop.permute.xlu0 %437  ;;  %459 = vst.msk [vmem:[%s252_s12 + $0x28] sm:$0xff] %vm453_vm5, %v440_v58 }
 0x164   : > { %458 = vst.msk [vmem:[%s252_s12 + $0x20] sm:$0xff] %vm453_vm5, %v438_v59 }
 0x166   : > { %v444_v60 = vpop.permute.xlu1 %443 }
 0x167   : > { %461 = vst.msk [vmem:[%s252_s12 + $0x38] sm:$0xff] %vm453_vm5, %v444_v60  ;;  %v432_v61 = vpop.permute.xlu0 %431 }
 0x168   : > { %455 = vst.msk [vmem:[%s252_s12 + $0x8] sm:$0xff] %vm453_vm5, %v432_v61 }
 0x17c   : > { %v509_v62 = vpop.permute.xlu0 %508 }
 0x17d   : > { %511 = vst.msk [vmem:[%s261_s15] sm:$0xff] %vm453_vm5, %v509_v62 }
 0x17e PF: > { %s16_s18 = sadd.s32 1, %s717_s18  }
 0x17f   : > { %p13_p5 = scmp.ge.s32.totalorder %s16_s18, 4  }
 0x181   :  { %15 = sbr.rel (!%p13_p5) target bundleno = 1 (0x1), region = 94 }

// kernel: bottleneck_forward.5
= control target key start
LH: loop header
LB: loop body
LE: loop exit
PB: predicated region body
PF: predicated region fallthrough
CT: control target
= control target key end

     0   :  { %s1854_s15 = smov 0   ;;  %s2339_s0 = inlined_call_operand.vmem [shape: f32[2,8,8,8], index: 0, kind: input, shape index: {}]   ;;  %s2340_s1 = inlined_call_operand.vmem [shape: f32[2,8], index: 1, kind: input, shape index: {}]   ;;  %s2341_s2 = inlined_call_operand.vmem [shape: bf16[72,8], index: 2, kind: input, shape index: {}]   ;;  %s2342_s3 = inlined_call_operand.vmem [shape: f32[2,8,8,8], index: 3, kind: output, shape index: {0}]   ;;  %s2343_s4 = inlined_call_operand.vmem [shape: f32[2,8,8], index: 4, kind: output, shape index: {1}]  }
   0x1 LB: > { %s1678_s16 = sadd.s32 4294967295, %s1818_s15   ;;  %p1682_p0 = scmp.ge.s32.totalorder %s1818_s15, 1  ;;  %s1818_s15 = sphi %s1854_s15, %s15_s15  }
   0x2   : > { %p165_p1 = scmp.lt.s32.totalorder %s1818_s15, 3 }
   0x4   : > { %p166_p2 = pnand %p1682_p0, %p165_p1 }
   0x5   : > { %vm260_vm0 = vcmask (!%p166_p2), 60416   ;;  %vm262_vm1 = vcmask (!%p166_p2), 57344   ;;  %vm268_vm2 = vsmask.f32 (!%p166_p2), 256  ;;  %v1820_v0 = vmov (!%p166_p2), 0   ;;  %p195_p3 = scmp.lt.s32.totalorder (!%p166_p2), %s1678_s16, 1 }
   0x6   : > { %169 = sbr.rel (%p166_p2) target bundleno = 529 (0x211), region = 32  ;;  %261 = vst.msk [vmem:[#allocation2] sm:$0xf] (!%p166_p2), %vm260_vm0, %v1820_v0  ;;  %265 = vst.msk [vmem:[#allocation2 + $0x48] sm:$0xf] (!%p166_p2), %vm260_vm0, %v1820_v0  ;;  %vm699_vm6 = vcmask (!%p166_p2), 1042432  }
   0x7   : > { %263 = vst.msk [vmem:[#allocation2 + $0x4] sm:$0x1] (!%p166_p2), %vm262_vm1, %v1820_v0  ;;  %266 = vst.msk [vmem:[#allocation2 + $0x4c] sm:$0x1] (!%p166_p2), %vm262_vm1, %v1820_v0  ;;  %vm300_vm3 = vsmask.f32 (!%p166_p2), 7938 }
   0x8   : > { %vm1867_vm4 = vmand (!%p166_p2), %vm262_vm1, %vm268_vm2  ;;  %v276_v2 = vld [vmem:[#allocation2 + $0x10] sm:$0x1] (!%p166_p2)  ;;  %v273_v4 = vld [vmem:[#allocation2 + $0x8] sm:$0x1] (!%p166_p2)  ;;  %vm700_vm7 = vcmask (!%p166_p2), 1046532   ;;  %s1821_s25 = smov (!%p166_p2), 16  }
   0x9   : > { %v277_v3 = vsel (!%p166_p2), %vm1867_vm4, 0, %v276_v2  ;;  %v282_v5 = vld [vmem:[#allocation2 + $0x20] sm:$0x1] (!%p166_p2)  ;;  %vm1877_vm5 = vmand (!%p166_p2), %vm262_vm1, %vm300_vm3  ;;  %v274_v8 = vsel (!%p166_p2), %vm1867_vm4, 0, %v273_v4  ;;  %v279_v10 = vld [vmem:[#allocation2 + $0x18] sm:$0x1] (!%p166_p2) }
   0xa   : > { %v1884_v7 = vld [vmem:[%s2340_s1] ss:$0 sm:$0xff] (!%p166_p2)  ;;  %278 = vst [vmem:[#allocation2 + $0x10] sm:$0x1] (!%p166_p2), %v277_v3  ;;  %v283_v9 = vsel (!%p166_p2), %vm1867_vm4, 0, %v282_v5  ;;  %v280_v12 = vsel (!%p166_p2), %vm1867_vm4, 0, %v279_v10  ;;  %vm1942_vm9 = vmor (!%p166_p2), %vm699_vm6, %vm700_vm7 }
   0xb   : > { %v305_v11 = vld [vmem:[#allocation2 + $0xc] sm:$0x1] (!%p166_p2)  ;;  %275 = vst [vmem:[#allocation2 + $0x8] sm:$0x1] (!%p166_p2), %v274_v8  ;;  %284 = vst [vmem:[#allocation2 + $0x20] sm:$0x1] (!%p166_p2), %v283_v9 }
   0xc   : > { %v306_v13 = vsel (!%p166_p2), %vm1877_vm5, 0, %v305_v11  ;;  %v308_v14 = vld [vmem:[#allocation2 + $0x14] sm:$0x1] (!%p166_p2)  ;;  %v1905_v15 = vld [vmem:[%s2340_s1 + $0x1] ss:$0 sm:$0xff] (!%p166_p2)  ;;  %vm1956_vm11 = vmand (!%p166_p2), %vm260_vm0, %vm300_vm3  ;;  %s1822_s26 = smov (!%p166_p2), 8  }
   0xd   : > { %s2355_s16 = smov (!%p195_p3, %s1678_s16), 1  ;;  %281 = vst [vmem:[#allocation2 + $0x18] sm:$0x1] %v280_v12  ;;  %307 = vst [vmem:[#allocation2 + $0xc] sm:$0x1] %v306_v13  ;;  %v309_v16 = vsel %vm1877_vm5, 0, %v308_v14 }
   0xe   : > { %s1737_s19 = sshll.u32 %s2355_s16, 6  ;;  %v311_v17 = vld [vmem:[#allocation2 + $0x1c] sm:$0x1]  ;;  %v302_v18 = vld [vmem:[#allocation2 + $0x4] sm:$0x1]  ;;  %s1823_s27 = smov 24  }
   0xf   : > { %s1900_s22 = scalar_lea.vmem %s2339_s0, %s1737_s19  ;;  %v270_v19 = vld [vmem:[#allocation2] sm:$0x1]  ;;  %310 = vst [vmem:[#allocation2 + $0x14] sm:$0x1] %v309_v16  ;;  %v314_v20 = vld [vmem:[#allocation2 + $0x24] sm:$0x1] }
  0x10   : > { %v303_v21 = vsel %vm1877_vm5, 0, %v302_v18  ;;  %v271_v22 = vsel %vm1867_vm4, 0, %v270_v19  ;;  %v211_v23 = vld [vmem:[%s1900_s22 + $0x8] sm:$0xff]  ;;  %v210_v24 = vld [vmem:[%s1900_s22] sm:$0xff]  ;;  %v213_v25 = vld [vmem:[%s1900_s22 + $0x18] sm:$0xff]  ;;  %v312_v30 = vsel %vm1877_vm5, 0, %v311_v17 }
  0x11   : > { %304 = vst [vmem:[#allocation2 + $0x4] sm:$0x1] %v303_v21  ;;  %272 = vst [vmem:[#allocation2] sm:$0x1] %v271_v22  ;;  %v224_v26 = vmul.f32 %v1884_v7, %v211_v23  ;;  %v223_v27 = vmul.f32 %v1884_v7, %v210_v24  ;;  %v226_v28 = vmul.f32 %v1884_v7, %v213_v25  ;;  %v212_v29 = vld [vmem:[%s1900_s22 + $0x10] sm:$0xff]  ;;  %v214_v31 = vld [vmem:[%s1900_s22 + $0x20] sm:$0xff] }
  0x12   : > { %v285_v32 = vld [vmem:[#allocation2 + $0x28] sm:$0x1]  ;;  %v225_v33 = vmul.f32 %v1884_v7, %v212_v29  ;;  %313 = vst [vmem:[#allocation2 + $0x1c] sm:$0x1] %v312_v30  ;;  %v315_v34 = vsel %vm1877_vm5, 0, %v314_v20  ;;  %v227_v35 = vmul.f32 %v1884_v7, %v214_v31  ;;  %v216_v38 = vld [vmem:[%s1900_s22 + $0x30] sm:$0xff] }
  0x13   : > { %v286_v36 = vsel %vm1867_vm4, 0, %v285_v32  ;;  %v317_v37 = vld [vmem:[#allocation2 + $0x2c] sm:$0x1]  ;;  %v237_v39 = vadd.f32 %v1905_v15, %v224_v26  ;;  %v236_v40 = vadd.f32 %v1905_v15, %v223_v27  ;;  %v239_v41 = vadd.f32 %v1905_v15, %v226_v28  ;;  %316 = vst [vmem:[#allocation2 + $0x24] sm:$0x1] %v315_v34  ;;  %s1824_s28 = smov 40  }
  0x14   : > { %287 = vst [vmem:[#allocation2 + $0x28] sm:$0x1] %v286_v36  ;;  %v318_v42 = vsel %vm1877_vm5, 0, %v317_v37  ;;  %v291_v43 = vld [vmem:[#allocation2 + $0x38] sm:$0x1]  ;;  %v238_v45 = vadd.f32 %v1905_v15, %v225_v33  ;;  %v240_v46 = vadd.f32 %v1905_v15, %v227_v35  ;;  %v229_v47 = vmul.f32 %v1884_v7, %v216_v38  ;;  %s1825_s29 = smov 32  }
  0x15   : > { %v667_v44 = vld [vmem:[#allocation2] sm:$0xe]  ;;  %319 = vst [vmem:[#allocation2 + $0x2c] sm:$0x1] %v318_v42  ;;  %v292_v48 = vsel %vm1867_vm4, 0, %v291_v43  ;;  %v245_v49 = vmax.f32 %v237_v39, 0.0 }
  0x16   : > { %v244_v50 = vmax.f32 %v236_v40, 0.0  ;;  %v247_v51 = vmax.f32 %v239_v41, 0.0  ;;  %293 = vst [vmem:[#allocation2 + $0x38] sm:$0x1] %v292_v48  ;;  %vm519_vm8 = vsmask.f32 3328  ;;  %v1949_v0 = vadd.f32 %v1905_v15, %v229_v47 }
  0x17   : > { %v246_v52 = vmax.f32 %v238_v45, 0.0  ;;  %v248_v53 = vmax.f32 %v240_v46, 0.0  ;;  %v1698_v55 = vrot.slane %v667_v44, 9  ;;  %vm520_vm10 = vsmask.f32 7440  ;;  %s1826_s30 = smov 48  }
  0x18   : > { %v1740_v56 = vpack.c.bf16 %v245_v49, %v245_v49  ;;  %v1739_v57 = vpack.c.bf16 %v244_v50, %v244_v50  ;;  %v668_v58 = vld [vmem:[#allocation2 + $0x4] sm:$0x1]  ;;  %v503_v59 = vld [vmem:[#allocation2] sm:$0xf]  ;;  %v1742_v61 = vpack.c.bf16 %v247_v51, %v247_v51  ;;  %v445_v17 = vld [vmem:[#allocation2 + $0x10] sm:$0xf] }
  0x19   : > { %v504_v60 = vld [vmem:[#allocation2 + $0x4] sm:$0x1]  ;;  %v1741_v62 = vpack.c.bf16 %v246_v52, %v246_v52  ;;  %v1946_v63 = vpack.c.bf16 %v248_v53, %v248_v53  ;;  %v704_v2 = vrot.slane %v668_v58, 5  ;;  %v523_v3 = vshrl.u32 %v503_v59, 16  ;;  %v439_v18 = vld [vmem:[#allocation2 + $0x8] sm:$0xf]  ;;  %vm1963_vm12 = vmor %vm519_vm8, %vm520_vm10 }
  0x1a   : > { %v526_v4 = vshll.u32 %v503_v59, 16  ;;  %v532_v5 = vshll.u32 %v504_v60, 16  ;;  %v365_v8 = vshrl.u32 %v1740_v56, 16  ;;  %v368_v9 = vshll.u32 %v1740_v56, 16  ;;  %v442_v23 = vld [vmem:[#allocation2 + $0xc] sm:$0x1] }
  0x1b   : > { %v357_v10 = vshrl.u32 %v1739_v57, 16  ;;  %v360_v11 = vshll.u32 %v1739_v57, 16  ;;  %v705_v12 = vsel %vm1942_vm9, %v1698_v55, %v704_v2  ;;  %v525_v13 = vrot.slane %v523_v3, 4  ;;  %v448_v28 = vld [vmem:[#allocation2 + $0x14] sm:$0x1]  ;;  %s1827_s7 = smov 56  }
  0x1c   : > { %v528_v14 = vrot.slane %v526_v4, 5  ;;  %v534_v16 = vrot.slane %v532_v5, 5  ;;  %734 = vrot.lane.b32.xlu0 %v705_v12, %s1821_s25  ;;  %v367_v19 = vrot.slane %v365_v8, 7  ;;  %v381_v21 = vshrl.u32 %v1742_v61, 16  ;;  %v457_v35 = vld [vmem:[#allocation2 + $0x20] sm:$0xf] }
  0x1d   : > { %v359_v20 = vrot.slane %v357_v10, 7  ;;  %v384_v22 = vshll.u32 %v1742_v61, 16  ;;  %v373_v26 = vshrl.u32 %v1741_v62, 16  ;;  %v376_v27 = vshll.u32 %v1741_v62, 16  ;;  %v451_v36 = vld [vmem:[#allocation2 + $0x18] sm:$0xf] }
  0x1e   : > { %v529_v25 = vor.u32 %v528_v14, %v525_v13  ;;  %v389_v29 = vshrl.u32 %v1946_v63, 16  ;;  %v370_v31 = vor.u32 %v368_v9, %v367_v19  ;;  %v371_v32 = vrot.slane %v367_v19, 4  ;;  %v323_v37 = vld [vmem:[#allocation2 + $0x3c] sm:$0x1]  ;;  %v460_v42 = vld [vmem:[#allocation2 + $0x24] sm:$0x1] }
  0x1f   : > { %v362_v33 = vor.u32 %v360_v11, %v359_v20  ;;  %v363_v34 = vrot.slane %v359_v20, 4  ;;  %v383_v39 = vrot.slane %v381_v21, 7  ;;  %v375_v40 = vrot.slane %v373_v26, 7  ;;  %v454_v41 = vld [vmem:[#allocation2 + $0x1c] sm:$0x1]  ;;  %v215_v19 = vld [vmem:[%s1900_s22 + $0x28] sm:$0xff] }
  0x20   : > { %v530_v38 = vrot.slane %v529_v25, 4  ;;  %v391_v43 = vrot.slane %v389_v29, 7  ;;  %v446_v44 = vsel %vm1956_vm11, %v370_v31, %v445_v17  ;;  %v449_v47 = vsel %vm1867_vm4, %v371_v32, %v448_v28  ;;  %v466_v48 = vld [vmem:[#allocation2 + $0x2c] sm:$0x1]  ;;  %v288_v49 = vld [vmem:[#allocation2 + $0x30] sm:$0x1] }
  0x21   : > { %v440_v45 = vsel %vm1956_vm11, %v362_v33, %v439_v18  ;;  %v443_v46 = vsel %vm1867_vm4, %v363_v34, %v442_v23  ;;  %v320_v50 = vld [vmem:[#allocation2 + $0x34] sm:$0x1]  ;;  %v487_v51 = vld [vmem:[#allocation2] sm:$0xf]  ;;  %447 = vst [vmem:[#allocation2 + $0x10] sm:$0xf] %v446_v44  ;;  %v386_v53 = vor.u32 %v384_v22, %v383_v39  ;;  %v378_v56 = vor.u32 %v376_v27, %v375_v40 }
  0x22   : > { %v535_v52 = vsel %vm1963_vm12, %v530_v38, %v534_v16  ;;  %441 = vst [vmem:[#allocation2 + $0x8] sm:$0xf] %v440_v45  ;;  %v387_v55 = vrot.slane %v383_v39, 4  ;;  %444 = vst [vmem:[#allocation2 + $0xc] sm:$0x1] %v443_v46  ;;  %v379_v59 = vrot.slane %v375_v40, 4 }
  0x23   : > { %450 = vst [vmem:[#allocation2 + $0x14] sm:$0x1] %v449_v47  ;;  %v463_v57 = vld [vmem:[#allocation2 + $0x28] sm:$0xf]  ;;  %v294_v58 = vld [vmem:[#allocation2 + $0x40] sm:$0x1]  ;;  %634 = vrot.lane.b32.xlu0 %v535_v52, %s1822_s26  ;;  %v458_v4 = vsel %vm1956_vm11, %v386_v53, %v457_v35  ;;  %v452_v5 = vsel %vm1956_vm11, %v378_v56, %v451_v36 }
  0x24   : > { %495 = vst.msk [vmem:[#allocation3] sm:$0xf] %vm260_vm0, %v487_v51  ;;  %v392_v60 = vshll.u32 %v1946_v63, 16  ;;  %v395_v61 = vrot.slane %v391_v43, 4  ;;  %v250_v62 = vmax.f32 %v1949_v0, 0.0  ;;  %v461_v8 = vsel %vm1867_vm4, %v387_v55, %v460_v42  ;;  %s1828_s12 = smov 64  }
  0x25   : > { %v326_v2 = vld [vmem:[#allocation2 + $0x44] sm:$0x1]  ;;  %v297_v3 = vld [vmem:[#allocation2 + $0x48] sm:$0x1]  ;;  %v324_v9 = vsel %vm1877_vm5, 0, %v323_v37  ;;  %v455_v63 = vsel %vm1867_vm4, %v379_v59, %v454_v41  ;;  %v289_v12 = vsel %vm1867_vm4, 0, %v288_v49 }
  0x26   : > { %459 = vst [vmem:[#allocation2 + $0x20] sm:$0xf] %v458_v4  ;;  %453 = vst [vmem:[#allocation2 + $0x18] sm:$0xf] %v452_v5  ;;  %v394_v0 = vor.u32 %v392_v60, %v391_v43  ;;  %v467_v10 = vsel %vm1867_vm4, %v395_v61, %v466_v48  ;;  %v1745_v11 = vpack.c.bf16 %v250_v62, %v250_v62  ;;  %v321_v13 = vsel %vm1877_vm5, 0, %v320_v50 }
  0x27   : > { %462 = vst [vmem:[#allocation2 + $0x24] sm:$0x1] %v461_v8  ;;  %325 = vst [vmem:[#allocation2 + $0x3c] sm:$0x1] %v324_v9  ;;  %v295_v17 = vsel %vm1867_vm4, 0, %v294_v58  ;;  %v327_v20 = vsel %vm1877_vm5, 0, %v326_v2  ;;  %v228_v43 = vmul.f32 %v1884_v7, %v215_v19 }
  0x28   : > { %456 = vst [vmem:[#allocation2 + $0x1c] sm:$0x1] %v455_v63  ;;  %468 = vst [vmem:[#allocation2 + $0x2c] sm:$0x1] %v467_v10  ;;  %v464_v14 = vsel %vm1956_vm11, %v394_v0, %v463_v57  ;;  %v405_v16 = vshrl.u32 %v1745_v11, 16  ;;  %v408_v18 = vshll.u32 %v1745_v11, 16 }
  0x29   : > { %290 = vst [vmem:[#allocation2 + $0x30] sm:$0x1] %v289_v12  ;;  %322 = vst [vmem:[#allocation2 + $0x34] sm:$0x1] %v321_v13  ;;  %v298_v21 = vsel %vm1867_vm4, 0, %v297_v3  ;;  %v2023_v9 = vadd.f32 %v1905_v15, %v228_v43  ;;  %vm1459_vm13 = vcmask 1043456  }
  0x2a   : > { %465 = vst [vmem:[#allocation2 + $0x28] sm:$0xf] %v464_v14  ;;  %296 = vst [vmem:[#allocation2 + $0x40] sm:$0x1] %v295_v17  ;;  %v768_v22 = vld [vmem:[#allocation2 + $0x10] sm:$0xf] }
  0x2b   : > { %v767_v23 = vld [vmem:[#allocation2 + $0x8] sm:$0xf]  ;;  %328 = vst [vmem:[#allocation2 + $0x44] sm:$0x1] %v327_v20  ;;  %299 = vst [vmem:[#allocation2 + $0x48] sm:$0x1] %v298_v21  ;;  %785 = vrot.lane.b32.xlu1 %v768_v22, %s1823_s27 }
  0x2c   : > { %v669_v25 = vld [vmem:[#allocation2 + $0x8] sm:$0xe]  ;;  %783 = vrot.lane.b32.xlu0 %v767_v23, %s1823_s27  ;;  %v670_v26 = vld [vmem:[#allocation2 + $0xc] sm:$0x1]  ;;  %v671_v28 = vld [vmem:[#allocation2 + $0x10] sm:$0xe] }
  0x2d   : > { %v1699_v27 = vrot.slane %v669_v25, 9  ;;  %v2008_v29 = vrot.slane %v405_v16, 7  ;;  %v475_v31 = vld [vmem:[#allocation2 + $0x38] sm:$0xf]  ;;  %v708_v32 = vrot.slane %v670_v26, 5  ;;  %v1700_v34 = vrot.slane %v671_v28, 9 }
  0x2e   : > { %v672_v33 = vld [vmem:[#allocation2 + $0x14] sm:$0x1]  ;;  %v977_v35 = vld [vmem:[#allocation2 + $0x8] sm:$0xe]  ;;  %v770_v36 = vld [vmem:[#allocation2 + $0x20] sm:$0xf] }
  0x2f   : > { %v769_v37 = vld [vmem:[#allocation2 + $0x18] sm:$0xf]  ;;  %v712_v38 = vrot.slane %v672_v33, 5  ;;  %v410_v39 = vor.u32 %v408_v18, %v2008_v29  ;;  %v674_v41 = vld [vmem:[#allocation2 + $0x1c] sm:$0x1]  ;;  %789 = vrot.lane.b32.xlu1 %v770_v36, %s1823_s27  ;;  %v709_v44 = vsel %vm1942_vm9, %v1699_v27, %v708_v32  ;;  %v1706_v47 = vrot.slane %v977_v35, 9 }
  0x30   : > { %v673_v40 = vld [vmem:[#allocation2 + $0x18] sm:$0xe]  ;;  %v978_v42 = vld [vmem:[#allocation2 + $0xc] sm:$0x1]  ;;  %787 = vrot.lane.b32.xlu0 %v769_v37, %s1823_s27  ;;  %v716_v46 = vrot.slane %v674_v41, 5  ;;  %vm658_vm14 = vcmask 126016  }
  0x31   : > { %v1701_v45 = vrot.slane %v673_v40, 9  ;;  %v979_v48 = vld [vmem:[#allocation2 + $0x10] sm:$0xe]  ;;  %v713_v49 = vsel %vm1942_vm9, %v1700_v34, %v712_v38  ;;  %v1011_v50 = vrot.slane %v978_v42, 5  ;;  %v980_v51 = vld [vmem:[#allocation2 + $0x14] sm:$0x1]  ;;  %v476_v55 = vsel %vm1956_vm11, %v410_v39, %v475_v31 }
  0x32   : > { %v1707_v52 = vrot.slane %v979_v48, 9  ;;  %v981_v53 = vld [vmem:[#allocation2 + $0x18] sm:$0xe]  ;;  %v1015_v56 = vrot.slane %v980_v51, 5  ;;  %v982_v57 = vld [vmem:[#allocation2 + $0x1c] sm:$0x1] }
  0x33   : > { %v1708_v58 = vrot.slane %v981_v53, 9  ;;  %v983_v59 = vld [vmem:[#allocation2 + $0x20] sm:$0xe]  ;;  %477 = vst [vmem:[#allocation2 + $0x38] sm:$0xf] %v476_v55  ;;  %v1019_v60 = vrot.slane %v982_v57, 5  ;;  %736 = vrot.lane.b32.xlu1 %v709_v44, %s1821_s25  ;;  %v717_v63 = vsel %vm1942_vm9, %v1701_v45, %v716_v46  ;;  %v1012_v0 = vsel %vm1942_vm9, %v1706_v47, %v1011_v50 }
  0x34   : > { %v984_v61 = vld [vmem:[#allocation2 + $0x24] sm:$0x1]  ;;  %v1709_v62 = vrot.slane %v983_v59, 9  ;;  %v505_v2 = vld [vmem:[#allocation2 + $0x8] sm:$0xf]  ;;  %738 = vrot.lane.b32.xlu0 %v713_v49, %s1821_s25  ;;  %v1016_v10 = vsel %vm1942_vm9, %v1707_v52, %v1015_v56  ;;  %vm758_vm15 = vcmask 191616  }
  0x35   : > { %v1023_v3 = vrot.slane %v984_v61, 5  ;;  %v506_v4 = vld [vmem:[#allocation2 + $0xc] sm:$0x1]  ;;  %v537_v5 = vshrl.u32 %v505_v2, 16  ;;  %v540_v8 = vshll.u32 %v505_v2, 16  ;;  %v1020_v14 = vsel %vm1942_vm9, %v1708_v58, %v1019_v60 }
  0x36   : > { %v546_v11 = vshll.u32 %v506_v4, 16  ;;  %v507_v12 = vld [vmem:[#allocation2 + $0x10] sm:$0xf]  ;;  %v508_v13 = vld [vmem:[#allocation2 + $0x14] sm:$0x1]  ;;  %vm968_vm1 = vcmask 322816  }
  0x37   : > { %v539_v16 = vrot.slane %v537_v5, 4  ;;  %v542_v17 = vrot.slane %v540_v8, 5  ;;  %v551_v18 = vshrl.u32 %v507_v12, 16  ;;  %v816_v19 = vld [vmem:[#allocation2 + $0x8] sm:$0xf]  ;;  %v1024_v20 = vsel %vm1942_vm9, %v1709_v62, %v1023_v3  ;;  %740 = vrot.lane.b32.xlu1 %v717_v63, %s1821_s25 }
  0x38   : > { %v554_v21 = vshll.u32 %v507_v12, 16  ;;  %v560_v22 = vshll.u32 %v508_v13, 16  ;;  %v817_v23 = vld [vmem:[#allocation2 + $0xc] sm:$0x1]  ;;  %v833_v25 = vshrl.u32 %v816_v19, 16  ;;  %1041 = vrot.lane.b32.xlu0 %v1012_v0, %s1824_s28  ;;  %v836_v28 = vshll.u32 %v816_v19, 16 }
  0x39   : > { %v543_v26 = vor.u32 %v542_v17, %v539_v16  ;;  %v553_v27 = vrot.slane %v551_v18, 4  ;;  %v842_v31 = vshll.u32 %v817_v23, 16  ;;  %v509_v32 = vld [vmem:[#allocation2 + $0x18] sm:$0xf]  ;;  %v548_v33 = vrot.slane %v546_v11, 5 }
  0x3a   : > { %v556_v34 = vrot.slane %v554_v21, 5  ;;  %v835_v35 = vrot.slane %v833_v25, 4  ;;  %v510_v36 = vld [vmem:[#allocation2 + $0x1c] sm:$0x1]  ;;  %v565_v37 = vshrl.u32 %v509_v32, 16  ;;  %v562_v39 = vrot.slane %v560_v22, 5 }
  0x3b   : > { %v544_v38 = vrot.slane %v543_v26, 4  ;;  %v838_v40 = vrot.slane %v836_v28, 5  ;;  %v568_v41 = vshll.u32 %v509_v32, 16  ;;  %v820_v42 = vld [vmem:[#allocation2 + $0x18] sm:$0xf]  ;;  %v574_v45 = vshll.u32 %v510_v36, 16  ;;  %1043 = vrot.lane.b32.xlu1 %v1016_v10, %s1824_s28 }
  0x3c   : > { %v557_v43 = vor.u32 %v556_v34, %v553_v27  ;;  %v567_v44 = vrot.slane %v565_v37, 4  ;;  %v821_v46 = vld [vmem:[#allocation2 + $0x1c] sm:$0x1]  ;;  %v861_v47 = vshrl.u32 %v820_v42, 16  ;;  %1045 = vrot.lane.b32.xlu0 %v1020_v14, %s1824_s28  ;;  %v844_v49 = vrot.slane %v842_v31, 5 }
  0x3d   : > { %v839_v48 = vor.u32 %v838_v40, %v835_v35  ;;  %v570_v50 = vrot.slane %v568_v41, 5  ;;  %v864_v51 = vshll.u32 %v820_v42, 16  ;;  %v818_v52 = vld [vmem:[#allocation2 + $0x10] sm:$0xf]  ;;  %v549_v53 = vsel %vm1963_vm12, %v544_v38, %v548_v33  ;;  %v819_v58 = vld [vmem:[#allocation2 + $0x14] sm:$0x1] }
  0x3e   : > { %v558_v55 = vrot.slane %v557_v43, 4  ;;  %v863_v56 = vrot.slane %v861_v47, 4  ;;  %v870_v57 = vshll.u32 %v821_v46, 16  ;;  %v847_v62 = vshrl.u32 %v818_v52, 16  ;;  %v822_v2 = vld [vmem:[#allocation2 + $0x20] sm:$0xf] }
  0x3f   : > { %v840_v59 = vrot.slane %v839_v48, 4  ;;  %v571_v60 = vor.u32 %v570_v50, %v567_v44  ;;  %v866_v61 = vrot.slane %v864_v51, 5  ;;  %v576_v4 = vrot.slane %v574_v45, 5  ;;  %1047 = vrot.lane.b32.xlu1 %v1024_v20, %s1824_s28  ;;  %v217_v12 = vld [vmem:[%s1900_s22 + $0x38] sm:$0xff]  ;;  %v823_v16 = vld [vmem:[#allocation2 + $0x24] sm:$0x1]  ;;  %s2297_s22 = scalar_lea.vmem %s2342_s3, %s1737_s19 }
  0x40   : > { %v563_v3 = vsel %vm1963_vm12, %v558_v55, %v562_v39  ;;  %v872_v5 = vrot.slane %v870_v57, 5  ;;  %v850_v8 = vshll.u32 %v818_v52, 16  ;;  %636 = vrot.lane.b32.xlu0 %v549_v53, %s1822_s26  ;;  %v849_v10 = vrot.slane %v847_v62, 4  ;;  %v1126_v25 = vld [vmem:[#allocation2 + $0x18] sm:$0xf]  ;;  %s1687_s19 = sshll.u32 %s2355_s16, 3 }
  0x41   : > { %v572_v63 = vrot.slane %v571_v60, 4  ;;  %v867_v0 = vor.u32 %v866_v61, %v863_v56  ;;  %v856_v11 = vshll.u32 %v819_v58, 16  ;;  %v845_v13 = vsel %vm1963_vm12, %v840_v59, %v844_v49  ;;  %v1124_v20 = vld [vmem:[#allocation2 + $0x10] sm:$0xf]  ;;  %v1127_v39 = vld [vmem:[#allocation2 + $0x1c] sm:$0x1] }
  0x42   : > { %v852_v14 = vrot.slane %v850_v8, 5  ;;  %v875_v17 = vshrl.u32 %v822_v2, 16  ;;  %v878_v18 = vshll.u32 %v822_v2, 16  ;;  %v230_v26 = vmul.f32 %v1884_v7, %v217_v12  ;;  %v1125_v7 = vld [vmem:[#allocation2 + $0x14] sm:$0x1] }
  0x43   : > { %v868_v19 = vrot.slane %v867_v0, 4  ;;  %638 = vrot.lane.b32.xlu1 %v563_v3, %s1822_s26  ;;  %v577_v27 = vsel %vm1963_vm12, %v572_v63, %v576_v4  ;;  %v858_v28 = vrot.slane %v856_v11, 5  ;;  %v884_v31 = vshll.u32 %v823_v16, 16  ;;  %v1128_v42 = vld [vmem:[#allocation2 + $0x20] sm:$0xf] }
  0x44   : > { %v853_v21 = vor.u32 %v852_v14, %v849_v10  ;;  %v877_v22 = vrot.slane %v875_v17, 4  ;;  %v880_v23 = vrot.slane %v878_v18, 5  ;;  %944 = vrot.lane.b32.xlu0 %v845_v13, %s1825_s29  ;;  %v249_v32 = vmax.f32 %v2023_v9, 0.0  ;;  %v1130_v9 = vld [vmem:[#allocation2 + $0x28] sm:$0xf] }
  0x45   : > { %v873_v33 = vsel %vm1963_vm12, %v868_v19, %v872_v5  ;;  %v1141_v36 = vshrl.u32 %v1124_v20, 16  ;;  %v1155_v37 = vshrl.u32 %v1126_v25, 16  ;;  %v1144_v38 = vshll.u32 %v1124_v20, 16  ;;  %v1075_v49 = vld [vmem:[#allocation2 + $0x10] sm:$0xf] }
  0x46   : > { %v854_v34 = vrot.slane %v853_v21, 4  ;;  %v881_v35 = vor.u32 %v880_v23, %v877_v22  ;;  %v1158_v40 = vshll.u32 %v1126_v25, 16  ;;  %v886_v43 = vrot.slane %v884_v31, 5  ;;  %v1129_v56 = vld [vmem:[#allocation2 + $0x24] sm:$0x1] }
  0x47   : > { %v1143_v41 = vrot.slane %v1141_v36, 4  ;;  %640 = vrot.lane.b32.xlu1 %v577_v27, %s1822_s26  ;;  %v1146_v44 = vrot.slane %v1144_v38, 5  ;;  %v2058_v45 = vpack.c.bf16 %v249_v32, %v249_v32  ;;  %v2061_v46 = vadd.f32 %v1905_v15, %v230_v26  ;;  %v1077_v15 = vld [vmem:[#allocation2 + $0x20] sm:$0xf]  ;;  %v1131_v5 = vld [vmem:[#allocation2 + $0x2c] sm:$0x1] }
  0x48   : > { %948 = vrot.lane.b32.xlu0 %v873_v33, %s1825_s29  ;;  %v859_v47 = vsel %vm1963_vm12, %v854_v34, %v858_v28  ;;  %v882_v48 = vrot.slane %v881_v35, 4  ;;  %v1150_v50 = vshll.u32 %v1125_v7, 16  ;;  %v1169_v51 = vshrl.u32 %v1128_v42, 16  ;;  %v511_v0 = vld [vmem:[#allocation2 + $0x20] sm:$0xf] }
  0x49   : > { %v1157_v52 = vrot.slane %v1155_v37, 4  ;;  %v1164_v53 = vshll.u32 %v1127_v39, 16  ;;  %v1147_v55 = vor.u32 %v1146_v44, %v1143_v41  ;;  %v1172_v57 = vshll.u32 %v1128_v42, 16  ;;  %v1076_v13 = vld [vmem:[#allocation2 + $0x18] sm:$0xf]  ;;  %v1803_v33 = vld [vmem:[%s2341_s2] sm:$0xff]  }
  0x4a   : > { %v1160_v58 = vrot.slane %v1158_v40, 5  ;;  %v1183_v59 = vshrl.u32 %v1130_v9, 16  ;;  %v1186_v60 = vshll.u32 %v1130_v9, 16  ;;  %v1171_v61 = vrot.slane %v1169_v51, 4  ;;  %v1285_v21 = vld [vmem:[#allocation2 + $0x10] sm:$0xe]  ;;  %1756 = vmatprep.subr.bf16.mxu0 %v1803_v33  ;;  %1774 = vmatprep.subr.bf16.mxu1 %v1803_v33 }
  0x4b   : > { %946 = vrot.lane.b32.xlu1 %v859_v47, %s1825_s29  ;;  %v1174_v62 = vrot.slane %v1172_v57, 5  ;;  %v887_v2 = vsel %vm1963_vm12, %v882_v48, %v886_v43  ;;  %v1148_v3 = vrot.slane %v1147_v55, 4  ;;  %v1152_v4 = vrot.slane %v1150_v50, 5  ;;  %v1286_v22 = vld [vmem:[#allocation2 + $0x14] sm:$0x1]  ;;  %1757 = vmatpush3.bf16.msra.mxu0 %v1803_v33  ;;  %v1804_v50 = vld [vmem:[%s2341_s2 + $0x8] sm:$0xff]  }
  0x4c   : > { %1091 = vrot.lane.b32.xlu0 %v1075_v49, %s1826_s30  ;;  %v1178_v8 = vshll.u32 %v1129_v56, 16  ;;  %v411_v10 = vrot.slane %v2008_v29, 4  ;;  %v397_v11 = vshrl.u32 %v2058_v45, 16  ;;  %v251_v12 = vmax.f32 %v2061_v46, 0.0  ;;  %v513_v26 = vld [vmem:[#allocation2 + $0x28] sm:$0xf]  ;;  %1779 = vmatpush3.bf16.msra.mxu1 %v1803_v33 }
  0x4d   : > { %v1175_v63 = vor.u32 %v1174_v62, %v1171_v61  ;;  %v1161_v14 = vor.u32 %v1160_v58, %v1157_v52  ;;  %v2072_v16 = vrot.slane %v1164_v53, 5  ;;  %v1185_v17 = vrot.slane %v1183_v59, 4  ;;  %v512_v28 = vld [vmem:[#allocation2 + $0x24] sm:$0x1]  ;;  %v478_v32 = vld [vmem:[#allocation2 + $0x3c] sm:$0x1]  ;;  %1758 = vmatprep.subr.bf16.mxu0 %v1804_v50  ;;  %1775 = vmatprep.subr.bf16.mxu1 %v1804_v50 }
  0x4e   : > { %v1188_v18 = vrot.slane %v1186_v60, 5  ;;  %v1192_v19 = vshll.u32 %v1131_v5, 16  ;;  %v579_v23 = vshrl.u32 %v511_v0, 16  ;;  %v1153_v29 = vsel %vm1963_vm12, %v1148_v3, %v1152_v4  ;;  %v1078_v41 = vld [vmem:[#allocation2 + $0x28] sm:$0xf] }
  0x4f   : > { %950 = vrot.lane.b32.xlu1 %v887_v2, %s1825_s29  ;;  %v1176_v25 = vrot.slane %v1175_v63, 4  ;;  %v1180_v20 = vrot.slane %v1178_v8, 5  ;;  %v582_v27 = vshll.u32 %v511_v0, 16  ;;  %v1162_v34 = vrot.slane %v1161_v14, 4  ;;  %v2087_v46 = vld [vmem:[#allocation2 + $0x18] sm:$0xe]  ;;  %1759 = vmatpush3.bf16.msra.mxu0 %v1804_v50 }
  0x50   : > { %1095 = vrot.lane.b32.xlu0 %v1077_v15, %s1826_s30  ;;  %v581_v31 = vrot.slane %v579_v23, 4  ;;  %v1189_v35 = vor.u32 %v1188_v18, %v1185_v17  ;;  %v1714_v36 = vrot.slane %v1285_v21, 9  ;;  %v1319_v7 = vrot.slane %v1286_v22, 5  ;;  %v472_v48 = vld [vmem:[#allocation2 + $0x34] sm:$0x1]  ;;  %1780 = vmatpush3.bf16.msra.mxu1 %v1804_v50 }
  0x51   : > { %v584_v37 = vrot.slane %v582_v27, 5  ;;  %v593_v38 = vshrl.u32 %v513_v26, 16  ;;  %v596_v39 = vshll.u32 %v513_v26, 16  ;;  %v479_v40 = vsel %vm1867_vm4, %v411_v10, %v478_v32  ;;  %v1288_v53 = vld [vmem:[#allocation2 + $0x1c] sm:$0x1] }
  0x52   : > { %v1181_v42 = vsel %vm1963_vm12, %v1176_v25, %v1180_v20  ;;  %v588_v44 = vshll.u32 %v512_v28, 16  ;;  %480 = vst [vmem:[#allocation2 + $0x3c] sm:$0x1] %v479_v40  ;;  %v399_v9 = vrot.slane %v397_v11, 7  ;;  %v400_v47 = vshll.u32 %v2058_v45, 16  ;;  %v1806_v27 = vld [vmem:[%s2341_s2 + $0x18] sm:$0xff]  }
  0x53   : > { %1093 = vrot.lane.b32.xlu1 %v1076_v13, %s1826_s30  ;;  %v585_v43 = vor.u32 %v584_v37, %v581_v31  ;;  %v1746_v49 = vpack.c.bf16 %v251_v12, %v251_v12  ;;  %v1167_v51 = vsel %vm1963_vm12, %v1162_v34, %v2072_v16  ;;  %v1194_v52 = vrot.slane %v1192_v19, 5  ;;  %v469_v56 = vld [vmem:[#allocation2 + $0x30] sm:$0xf]  ;;  %v514_v45 = vld [vmem:[#allocation2 + $0x2c] sm:$0x1] }
  0x54   : > { %1252 = vrot.lane.b32.xlu0 %v1153_v29, %s1827_s7  ;;  %v403_v55 = vrot.slane %v399_v9, 4  ;;  %v1190_v57 = vrot.slane %v1189_v35, 4  ;;  %v595_v58 = vrot.slane %v593_v38, 4  ;;  %v598_v59 = vrot.slane %v596_v39, 5  ;;  %v1289_v2 = vld [vmem:[#allocation2 + $0x20] sm:$0xe] }
  0x55   : > { %v402_v60 = vor.u32 %v400_v47, %v399_v9  ;;  %v1320_v61 = vsel %vm1942_vm9, %v1714_v36, %v1319_v7  ;;  %v586_v15 = vrot.slane %v585_v43, 4  ;;  %v590_v62 = vrot.slane %v588_v44, 5  ;;  %v1290_v3 = vld [vmem:[#allocation2 + $0x24] sm:$0x1]  ;;  %v517_v5 = vld [vmem:[#allocation2 + $0x38] sm:$0xf] }
  0x56   : > { %v473_v4 = vsel %vm1867_vm4, %v403_v55, %v472_v48  ;;  %v413_v63 = vshrl.u32 %v1746_v49, 16  ;;  %v1715_v0 = vrot.slane %v2087_v46, 9  ;;  %v1323_v10 = vrot.slane %v1288_v53, 5  ;;  %v1805_v13 = vld [vmem:[%s2341_s2 + $0x10] sm:$0xff]   ;;  %v481_v29 = vld [vmem:[#allocation2 + $0x40] sm:$0xf] }
  0x57   : > { %1097 = vrot.lane.b32.xlu1 %v1078_v41, %s1826_s30  ;;  %v470_v8 = vsel %vm1956_vm11, %v402_v60, %v469_v56  ;;  %474 = vst [vmem:[#allocation2 + $0x34] sm:$0x1] %v473_v4  ;;  %v602_v11 = vshll.u32 %v514_v45, 16  ;;  %v416_v12 = vshll.u32 %v1746_v49, 16  ;;  %v599_v14 = vor.u32 %v598_v59, %v595_v58  ;;  %v484_v25 = vld [vmem:[#allocation2 + $0x44] sm:$0x1]  ;;  %1760 = vmatprep.subr.bf16.mxu0 %v1805_v13 }
  0x58   : > { %1256 = vrot.lane.b32.xlu0 %v1181_v42, %s1827_s7  ;;  %471 = vst [vmem:[#allocation2 + $0x30] sm:$0xf] %v470_v8  ;;  %v1716_v16 = vrot.slane %v1289_v2, 9  ;;  %v1327_v17 = vrot.slane %v1290_v3, 5  ;;  %v415_v18 = vrot.slane %v413_v63, 7  ;;  %v1195_v19 = vsel %vm1963_vm12, %v1190_v57, %v1194_v52  ;;  %1776 = vmatprep.subr.bf16.mxu1 %v1805_v13 }
  0x59   : > { %v591_v21 = vsel %vm1963_vm12, %v586_v15, %v590_v62  ;;  %v621_v22 = vshrl.u32 %v517_v5, 16  ;;  %v624_v23 = vshll.u32 %v517_v5, 16  ;;  %1761 = vmatpush3.bf16.msra.mxu0 %v1805_v13  ;;  %1781 = vmatpush3.bf16.msra.mxu1 %v1805_v13  ;;  %v600_v28 = vrot.slane %v599_v14, 4  ;;  %v1291_v32 = vld [vmem:[#allocation2 + $0x28] sm:$0xe] }
  0x5a   : > { %v418_v20 = vor.u32 %v416_v12, %v415_v18  ;;  %v419_v26 = vrot.slane %v415_v18, 4  ;;  %v604_v31 = vrot.slane %v602_v11, 5  ;;  %v1324_v35 = vsel %vm1942_vm9, %v1715_v0, %v1323_v10  ;;  %v1292_v36 = vld [vmem:[#allocation2 + $0x2c] sm:$0x1]  ;;  %1762 = vmatprep.subr.bf16.mxu0 %v1806_v27  ;;  %1777 = vmatprep.subr.bf16.mxu1 %v1806_v27  ;;  %v518_v40 = vld [vmem:[#allocation2 + $0x3c] sm:$0x1] }
  0x5b   : > { %1254 = vrot.lane.b32.xlu1 %v1167_v51, %s1827_s7  ;;  %v1328_v37 = vsel %vm1942_vm9, %v1716_v16, %v1327_v17  ;;  %v623_v7 = vrot.slane %v621_v22, 4  ;;  %v626_v38 = vrot.slane %v624_v23, 5  ;;  %v1717_v44 = vrot.slane %v1291_v32, 9  ;;  %v675_v50 = vld [vmem:[#allocation2 + $0x20] sm:$0xe] }
  0x5c   : > { %1349 = vrot.lane.b32.xlu0 %v1320_v61, %s1828_s12  ;;  %v482_v33 = vsel %vm1956_vm11, %v418_v20, %v481_v29  ;;  %v485_v34 = vsel %vm1867_vm4, %v419_v26, %v484_v25  ;;  %v605_v43 = vsel %vm1963_vm12, %v600_v28, %v604_v31  ;;  %v1331_v9 = vrot.slane %v1292_v36, 5  ;;  %v676_v51 = vld [vmem:[#allocation2 + $0x24] sm:$0x1]  ;;  %v677_v56 = vld [vmem:[#allocation2 + $0x28] sm:$0xe] }
  0x5d   : > { %483 = vst [vmem:[#allocation2 + $0x40] sm:$0xf] %v482_v33  ;;  %486 = vst [vmem:[#allocation2 + $0x44] sm:$0x1] %v485_v34  ;;  %1763 = vmatpush3.bf16.msra.mxu0 %v1806_v27  ;;  %1782 = vmatpush3.bf16.msra.mxu1 %v1806_v27  ;;  %v627_v46 = vor.u32 %v626_v38, %v623_v7  ;;  %v630_v47 = vshll.u32 %v518_v40, 16  ;;  %v1702_v45 = vrot.slane %v675_v50, 9 }
  0x5e   : > { %v516_v39 = vld [vmem:[#allocation2 + $0x34] sm:$0x1]  ;;  %v1332_v55 = vsel %vm1942_vm9, %v1717_v44, %v1331_v9  ;;  %v678_v57 = vld [vmem:[#allocation2 + $0x2c] sm:$0x1]  ;;  %v720_v61 = vrot.slane %v676_v51, 5  ;;  %v1703_v4 = vrot.slane %v677_v56, 9 }
  0x5f   : > { %1258 = vrot.lane.b32.xlu1 %v1195_v19, %s1827_s7  ;;  %v515_v24 = vld [vmem:[#allocation2 + $0x30] sm:$0xf]  ;;  %v616_v42 = vshll.u32 %v516_v39, 16  ;;  %v628_v58 = vrot.slane %v627_v46, 4  ;;  %v632_v59 = vrot.slane %v630_v47, 5  ;;  %v724_v5 = vrot.slane %v678_v57, 5 }
  0x60   : > { %642 = vrot.lane.b32.xlu0 %v591_v21, %s1822_s26  ;;  %v607_v1 = vshrl.u32 %v515_v24, 16  ;;  %v610_v41 = vshll.u32 %v515_v24, 16  ;;  %v824_v15 = vld [vmem:[#allocation2 + $0x28] sm:$0xf]  ;;  %v679_v62 = vld [vmem:[#allocation2 + $0x30] sm:$0xe]  ;;  %v721_v12 = vsel %vm1942_vm9, %v1702_v45, %v720_v61 }
  0x61   : > { %v618_v53 = vrot.slane %v616_v42, 5  ;;  %v680_v2 = vld [vmem:[#allocation2 + $0x34] sm:$0x1]  ;;  %v681_v8 = vld [vmem:[#allocation2 + $0x38] sm:$0xe]  ;;  %v889_v0 = vshrl.u32 %v824_v15, 16  ;;  %v633_v11 = vsel %vm1963_vm12, %v628_v58, %v632_v59  ;;  %v725_v26 = vsel %vm1942_vm9, %v1703_v4, %v724_v5 }
  0x62   : > { %v609_v48 = vrot.slane %v607_v1, 4  ;;  %v612_v49 = vrot.slane %v610_v41, 5  ;;  %v682_v63 = vld [vmem:[#allocation2 + $0x3c] sm:$0x1]  ;;  %v892_v10 = vshll.u32 %v824_v15, 16  ;;  %v1704_v13 = vrot.slane %v679_v62, 9 }
  0x63   : > { %1351 = vrot.lane.b32.xlu1 %v1324_v35, %s1828_s12  ;;  %v728_v14 = vrot.slane %v680_v2, 5  ;;  %v828_v16 = vld [vmem:[#allocation2 + $0x38] sm:$0xf]  ;;  %v826_v17 = vld [vmem:[#allocation2 + $0x30] sm:$0xf]  ;;  %v1705_v18 = vrot.slane %v681_v8, 9 }
  0x64   : > { %1353 = vrot.lane.b32.xlu0 %v1328_v37, %s1828_s12  ;;  %v613_v52 = vor.u32 %v612_v49, %v609_v48  ;;  %v732_v19 = vrot.slane %v682_v63, 5  ;;  %v329_v21 = vld [vmem:[#allocation2 + $0x4c] sm:$0x1]  ;;  %v891_v23 = vrot.slane %v889_v0, 4  ;;  %v894_v29 = vrot.slane %v892_v10, 5 }
  0x65   : > { %v825_v22 = vld [vmem:[#allocation2 + $0x2c] sm:$0x1]  ;;  %v917_v25 = vshrl.u32 %v828_v16, 16  ;;  %v920_v20 = vshll.u32 %v828_v16, 16  ;;  %v729_v27 = vsel %vm1942_vm9, %v1704_v13, %v728_v14  ;;  %v903_v28 = vshrl.u32 %v826_v17, 16 }
  0x66   : > { %v614_v60 = vrot.slane %v613_v52, 4  ;;  %v906_v31 = vshll.u32 %v826_v17, 16  ;;  %v830_v32 = vld [vmem:[#allocation2 + $0x40] sm:$0xf]  ;;  %v898_v33 = vshll.u32 %v825_v22, 16  ;;  %v330_v34 = vsel %vm1877_vm5, 0, %v329_v21 }
  0x67   : > { %644 = vrot.lane.b32.xlu1 %v605_v43, %s1822_s26  ;;  %v733_v35 = vsel %vm1942_vm9, %v1705_v18, %v732_v19  ;;  %v771_v36 = vld [vmem:[#allocation2 + $0x28] sm:$0xf]  ;;  %v895_v37 = vor.u32 %v894_v29, %v891_v23  ;;  %v829_v7 = vld [vmem:[#allocation2 + $0x3c] sm:$0x1]  ;;  %v919_v38 = vrot.slane %v917_v25, 4  ;;  %v922_v39 = vrot.slane %v920_v20, 5 }
  0x68   : > { %v619_v3 = vsel %vm1963_vm12, %v614_v60, %v618_v53  ;;  %331 = vst [vmem:[#allocation2 + $0x4c] sm:$0x1] %v330_v34  ;;  %v827_v40 = vld [vmem:[#allocation2 + $0x34] sm:$0x1]  ;;  %v905_v24 = vrot.slane %v903_v28, 4  ;;  %v908_v1 = vrot.slane %v906_v31, 5 }
  0x69   : > { %646 = vrot.lane.b32.xlu0 %v619_v3, %s1822_s26  ;;  %v931_v41 = vshrl.u32 %v830_v32, 16  ;;  %v934_v42 = vshll.u32 %v830_v32, 16  ;;  %v772_v6 = vld [vmem:[#allocation2 + $0x30] sm:$0xf]  ;;  %v773_v43 = vld [vmem:[#allocation2 + $0x38] sm:$0xf]  ;;  %v923_v48 = vor.u32 %v922_v39, %v919_v38 }
  0x6a   : > { %v900_v44 = vrot.slane %v898_v33, 5  ;;  %v912_v9 = vshll.u32 %v827_v40, 16  ;;  %v896_v46 = vrot.slane %v895_v37, 4  ;;  %v831_v47 = vld [vmem:[#allocation2 + $0x44] sm:$0x1]  ;;  %v926_v49 = vshll.u32 %v829_v7, 16 }
  0x6b   : > { %1355 = vrot.lane.b32.xlu1 %v1332_v55, %s1828_s12  ;;  %v909_v50 = vor.u32 %v908_v1, %v905_v24  ;;  %v933_v51 = vrot.slane %v931_v41, 4  ;;  %v936_v52 = vrot.slane %v934_v42, 5  ;;  %v488_v53 = vld [vmem:[#allocation2 + $0x8] sm:$0xf]  ;;  %v489_v55 = vld [vmem:[#allocation2 + $0x10] sm:$0xf] }
  0x6c   : > { %496 = vst.msk [vmem:[#allocation3 + $0x4] sm:$0xf] %vm260_vm0, %v488_v53  ;;  %497 = vst.msk [vmem:[#allocation3 + $0x8] sm:$0xf] %vm260_vm0, %v489_v55  ;;  %v490_v56 = vld [vmem:[#allocation2 + $0x18] sm:$0xf]  ;;  %v901_v3 = vsel %vm1963_vm12, %v896_v46, %v900_v44 }
  0x6d   : > { %742 = vrot.lane.b32.xlu0 %v721_v12, %s1821_s25  ;;  %v985_v57 = vld [vmem:[#allocation2 + $0x28] sm:$0xe]  ;;  %498 = vst.msk [vmem:[#allocation3 + $0xc] sm:$0xf] %vm260_vm0, %v490_v56  ;;  %v940_v45 = vshll.u32 %v831_v47, 16  ;;  %v924_v58 = vrot.slane %v923_v48, 4  ;;  %v937_v4 = vor.u32 %v936_v52, %v933_v51 }
  0x6e   : > { %v928_v59 = vrot.slane %v926_v49, 5  ;;  %v986_v60 = vld [vmem:[#allocation2 + $0x2c] sm:$0x1]  ;;  %v492_v61 = vld [vmem:[#allocation2 + $0x28] sm:$0xf]  ;;  %v910_v62 = vrot.slane %v909_v50, 4 }
  0x6f   : > { %648 = vrot.lane.b32.xlu1 %v633_v11, %s1822_s26  ;;  %v774_v15 = vld [vmem:[#allocation2 + $0x40] sm:$0xf]  ;;  %v914_v2 = vrot.slane %v912_v9, 5  ;;  %500 = vst.msk [vmem:[#allocation3 + $0x14] sm:$0xf] %vm260_vm0, %v492_v61  ;;  %v942_v10 = vrot.slane %v940_v45, 5 }
  0x70   : > { %v491_v5 = vld [vmem:[#allocation2 + $0x20] sm:$0xf]  ;;  %v494_v8 = vld [vmem:[#allocation2 + $0x38] sm:$0xf]  ;;  %v493_v63 = vld [vmem:[#allocation2 + $0x30] sm:$0xf]  ;;  %v929_v11 = vsel %vm1963_vm12, %v924_v58, %v928_v59 }
  0x71   : > { %746 = vrot.lane.b32.xlu0 %v729_v27, %s1821_s25  ;;  %499 = vst.msk [vmem:[#allocation3 + $0x10] sm:$0xf] %vm260_vm0, %v491_v5  ;;  %502 = vst.msk [vmem:[#allocation3 + $0x1c] sm:$0xf] %vm260_vm0, %v494_v8  ;;  %v1808_v0 = vld [vmem:[%s2341_s2 + $0x20] ss:$0 sps:$4 sm:$0xff]   ;;  %v915_v16 = vsel %vm1963_vm12, %v910_v62, %v914_v2 }
  0x72   : > { %501 = vst.msk [vmem:[#allocation3 + $0x18] sm:$0xf] %vm260_vm0, %v493_v63  ;;  %v987_v12 = vld [vmem:[#allocation2 + $0x30] sm:$0xe]  ;;  %v988_v13 = vld [vmem:[#allocation2 + $0x34] sm:$0x1]  ;;  %1784 = vmatprep.subr.msk.bf16.mxu0 %vm1459_vm13, %v1808_v0  ;;  %1785 = vmatprep.subr.msk.bf16.mxu1 %vm1459_vm13, %v1808_v0 }
  0x73   : > { %744 = vrot.lane.b32.xlu1 %v725_v26, %s1821_s25  ;;  %v1710_v14 = vrot.slane %v985_v57, 9  ;;  %v938_v17 = vrot.slane %v937_v4, 4  ;;  %v1027_v18 = vrot.slane %v986_v60, 5  ;;  %v1132_v19 = vld [vmem:[#allocation2 + $0x30] sm:$0xf]  ;;  %v1461_v21 = vsel %vm1459_vm13, %v1808_v0, 0 }
  0x74   : > { %v989_v22 = vld [vmem:[#allocation2 + $0x38] sm:$0xe]  ;;  %v990_v23 = vld [vmem:[#allocation2 + $0x3c] sm:$0x1]  ;;  %1765 = vmatpush3.bf16.msra.mxu0 %v1461_v21  ;;  %1783 = vmatpush3.bf16.msra.mxu1 %v1461_v21  ;;  %v1711_v29 = vrot.slane %v987_v12, 9  ;;  %v1031_v25 = vrot.slane %v988_v13, 5 }
  0x75   : > { %791 = vrot.lane.b32.xlu0 %v771_v36, %s1823_s27  ;;  %v991_v20 = vld [vmem:[#allocation2 + $0x40] sm:$0xe]  ;;  %v992_v26 = vld [vmem:[#allocation2 + $0x44] sm:$0x1]  ;;  %v1197_v27 = vshrl.u32 %v1132_v19, 16  ;;  %v1200_v28 = vshll.u32 %v1132_v19, 16  ;;  %v943_v31 = vsel %vm1963_vm12, %v938_v17, %v942_v10  ;;  %v1028_v32 = vsel %vm1942_vm9, %v1710_v14, %v1027_v18 }
  0x76   : > { %v1712_v33 = vrot.slane %v989_v22, 9  ;;  %v1035_v34 = vrot.slane %v990_v23, 5  ;;  %v1136_v36 = vld [vmem:[#allocation2 + $0x40] sm:$0xf]  ;;  %v1713_v37 = vrot.slane %v991_v20, 9  ;;  %v1039_v7 = vrot.slane %v992_v26, 5 }
  0x77   : > { %748 = vrot.lane.b32.xlu1 %v733_v35, %s1821_s25  ;;  %v1134_v35 = vld [vmem:[#allocation2 + $0x38] sm:$0xf]  ;;  %v1199_v40 = vrot.slane %v1197_v27, 4  ;;  %v1202_v24 = vrot.slane %v1200_v28, 5  ;;  %v1032_v1 = vsel %vm1942_vm9, %v1711_v29, %v1031_v25  ;;  %v1133_v42 = vld [vmem:[#allocation2 + $0x34] sm:$0x1]  ;;  %s208_s25 = scalar_lea.vmem %s2343_s4, %s1687_s19 }
  0x78   : > { %v1211_v38 = vshrl.u32 %v1134_v35, 16  ;;  %v1214_v39 = vshll.u32 %v1134_v35, 16  ;;  %v1036_v41 = vsel %vm1942_vm9, %v1712_v33, %v1035_v34  ;;  %v1138_v44 = vld [vmem:[#allocation2 + $0x48] sm:$0xf]  ;;  %v1040_v9 = vsel %vm1942_vm9, %v1713_v37, %v1039_v7  ;;  %v1079_v46 = vld [vmem:[#allocation2 + $0x30] sm:$0xf] }
  0x79   : > { %795 = vrot.lane.b32.xlu0 %v773_v43, %s1823_s27  ;;  %v1228_v43 = vshll.u32 %v1136_v36, 16  ;;  %v1135_v47 = vld [vmem:[#allocation2 + $0x3c] sm:$0x1]  ;;  %v1203_v50 = vor.u32 %v1202_v24, %v1199_v40  ;;  %v1206_v51 = vshll.u32 %v1133_v42, 16  ;;  %v1239_v52 = vshrl.u32 %v1138_v44, 16 }
  0x7a   : > { %v1213_v48 = vrot.slane %v1211_v38, 4  ;;  %v1216_v49 = vrot.slane %v1214_v39, 5  ;;  %v1242_v53 = vshll.u32 %v1138_v44, 16  ;;  %v1137_v55 = vld [vmem:[#allocation2 + $0x44] sm:$0x1]  ;;  %v1220_v59 = vshll.u32 %v1135_v47, 16 }
  0x7b   : > { %793 = vrot.lane.b32.xlu1 %v772_v6, %s1823_s27  ;;  %v1225_v6 = vshrl.u32 %v1136_v36, 16  ;;  %v1230_v57 = vrot.slane %v1228_v43, 5  ;;  %v1080_v45 = vld [vmem:[#allocation2 + $0x38] sm:$0xf]  ;;  %v1208_v60 = vrot.slane %v1206_v51, 5  ;;  %v1234_v61 = vshll.u32 %v1137_v55, 16 }
  0x7c   : > { %v1217_v58 = vor.u32 %v1216_v49, %v1213_v48  ;;  %v1081_v62 = vld [vmem:[#allocation2 + $0x40] sm:$0xf]  ;;  %v1204_v2 = vrot.slane %v1203_v50, 4  ;;  %v1244_v4 = vrot.slane %v1242_v53, 5  ;;  %v1139_v8 = vld [vmem:[#allocation2 + $0x4c] sm:$0x1] }
  0x7d   : > { %952 = vrot.lane.b32.xlu0 %v901_v3, %s1825_s29  ;;  %v1227_v56 = vrot.slane %v1225_v6, 4  ;;  %v1241_v3 = vrot.slane %v1239_v52, 4  ;;  %v1222_v0 = vrot.slane %v1220_v59, 5  ;;  %v1236_v10 = vrot.slane %v1234_v61, 5  ;;  %v1293_v17 = vld [vmem:[#allocation2 + $0x30] sm:$0xe] }
  0x7e   : > { %v1218_v63 = vrot.slane %v1217_v58, 4  ;;  %v1209_v12 = vsel %vm1963_vm12, %v1204_v2, %v1208_v60  ;;  %v1248_v14 = vshll.u32 %v1139_v8, 16  ;;  %v1294_v18 = vld [vmem:[#allocation2 + $0x34] sm:$0x1]  ;;  %v1295_v22 = vld [vmem:[#allocation2 + $0x38] sm:$0xe] }
  0x7f   : > { %797 = vrot.lane.b32.xlu1 %v774_v15, %s1823_s27  ;;  %v1231_v5 = vor.u32 %v1230_v57, %v1227_v56  ;;  %v1245_v13 = vor.u32 %v1244_v4, %v1241_v3  ;;  %v1718_v23 = vrot.slane %v1293_v17, 9  ;;  %v1296_v26 = vld [vmem:[#allocation2 + $0x3c] sm:$0x1]  ;;  %v1335_v27 = vrot.slane %v1294_v18, 5  ;;  %v1297_v28 = vld [vmem:[#allocation2 + $0x40] sm:$0xe] }
  0x80   : > { %v1223_v21 = vsel %vm1963_vm12, %v1218_v63, %v1222_v0  ;;  %v1250_v25 = vrot.slane %v1248_v14, 5  ;;  %vm807_vm0 = vcmask 257216   ;;  %v1339_v33 = vrot.slane %v1296_v26, 5  ;;  %v1299_v39 = vld [vmem:[#allocation2 + $0x48] sm:$0xe] }
  0x81   : > { %956 = vrot.lane.b32.xlu0 %v929_v11, %s1825_s29  ;;  %v1082_v11 = vld [vmem:[#allocation2 + $0x48] sm:$0xf]  ;;  %v1246_v29 = vrot.slane %v1245_v13, 4  ;;  %v1336_v35 = vsel %vm1942_vm9, %v1718_v23, %v1335_v27  ;;  %v1720_v36 = vrot.slane %v1297_v28, 9  ;;  %v1300_v40 = vld [vmem:[#allocation2 + $0x4c] sm:$0x1] }
  0x82   : > { %v1721_v30 = vrot.slane %v1299_v39, 9  ;;  %vm1065_vm2 = vcmask 388416   ;;  %vm1115_vm3 = vcmask 454016   ;;  %vm1276_vm4 = vcmask 519616  }
  0x83   : > { %954 = vrot.lane.b32.xlu1 %v915_v16, %s1825_s29  ;;  %v1232_v16 = vrot.slane %v1231_v5, 4  ;;  %v1251_v34 = vsel %vm1963_vm12, %v1246_v29, %v1250_v25  ;;  %vm1373_vm5 = vcmask 585216   ;;  %vm1446_vm6 = vcmask 588800  }
  0x84   : > { %vm1528_vm7 = vcmask 64512   ;;  %vm1579_vm8 = vcmask 1040384  }
  0x85   : > { %1049 = vrot.lane.b32.xlu0 %v1028_v32, %s1824_s28  ;;  %v1237_v20 = vsel %vm1963_vm12, %v1232_v16, %v1236_v10  ;;  %v1719_v32 = vrot.slane %v1295_v22, 9 }
  0x87   : > { %958 = vrot.lane.b32.xlu1 %v943_v31, %s1825_s29  ;;  %v1298_v31 = vld [vmem:[#allocation2 + $0x44] sm:$0x1]  ;;  %v1340_v24 = vsel %vm1942_vm9, %v1719_v32, %v1339_v33 }
  0x88   : > { %v1343_v37 = vrot.slane %v1298_v31, 5 }
  0x89   : > { %1053 = vrot.lane.b32.xlu0 %v1036_v41, %s1824_s28 }
  0x8a   : > { %v1344_v41 = vsel %vm1942_vm9, %v1720_v36, %v1343_v37 }
  0x8b   : > { %1051 = vrot.lane.b32.xlu1 %v1032_v1, %s1824_s28  ;;  %v1347_v1 = vrot.slane %v1300_v40, 5 }
  0x8d   : > { %1099 = vrot.lane.b32.xlu0 %v1079_v46, %s1826_s30  ;;  %v1348_v43 = vsel %vm1942_vm9, %v1721_v30, %v1347_v1  ;;  %vm1581_vm9 = vcmask 1041408  }
  0x8e   : > { %v735_v15 = vpop.permute.xlu0 %734 }
  0x8f   : > { %1055 = vrot.lane.b32.xlu1 %v1040_v9, %s1824_s28 }
  0x91   : > { %1103 = vrot.lane.b32.xlu0 %v1081_v62, %s1826_s30 }
  0x93   : > { %1101 = vrot.lane.b32.xlu1 %v1080_v45, %s1826_s30 }
  0x95   : > { %v635_v19 = vpop.permute.xlu0 %634  ;;  %1260 = vrot.lane.b32.xlu0 %v1209_v12, %s1827_s7 }
  0x96   : > { %659 = vst.msk [vmem:[#allocation3] sm:$0xf] %vm658_vm14, %v635_v19 }
  0x97   : > { %1105 = vrot.lane.b32.xlu1 %v1082_v11, %s1826_s30  ;;  %759 = vst.msk [vmem:[#allocation3] sm:$0xf] %vm758_vm15, %v735_v15 }
  0x99   : > { %1264 = vrot.lane.b32.xlu0 %v1237_v20, %s1827_s7 }
  0x9b   : > { %1262 = vrot.lane.b32.xlu1 %v1223_v21, %s1827_s7 }
  0x9d   : > { %v786_v7 = vpop.permute.xlu1 %785  ;;  %1357 = vrot.lane.b32.xlu0 %v1336_v35, %s1828_s12 }
  0x9e   : > { %v784_v38 = vpop.permute.xlu0 %783 }
  0x9f   : > { %808 = vst.msk [vmem:[#allocation3] sm:$0xf] %vm807_vm0, %v784_v38  ;;  %1266 = vrot.lane.b32.xlu1 %v1251_v34, %s1827_s7 }
  0xa1   : > { %v790_v42 = vpop.permute.xlu1 %789  ;;  %1361 = vrot.lane.b32.xlu0 %v1344_v41, %s1828_s12 }
  0xa2   : > { %v788_v6 = vpop.permute.xlu0 %787 }
  0xa3   : > { %1359 = vrot.lane.b32.xlu1 %v1340_v24, %s1828_s12 }
  0xa5   : > { %v737_v44 = vpop.permute.xlu1 %736 }
  0xa6   : > { %v739_v9 = vpop.permute.xlu0 %738 }
  0xa7   : > { %1363 = vrot.lane.b32.xlu1 %v1348_v43, %s1828_s12 }
  0xa9   : > { %v741_v46 = vpop.permute.xlu1 %740 }
  0xaa   : > { %v1042_v47 = vpop.permute.xlu0 %1041 }
  0xad   : > { %v1044_v48 = vpop.permute.xlu1 %1043 }
  0xae   : > { %v1046_v49 = vpop.permute.xlu0 %1045 }
  0xb1   : > { %v1048_v50 = vpop.permute.xlu1 %1047 }
  0xb2   : > { %v637_v51 = vpop.permute.xlu0 %636 }
  0xb3   : > { %660 = vst.msk [vmem:[#allocation3 + $0x4] sm:$0xf] %vm658_vm14, %v637_v51 }
  0xb4   : > { %760 = vst.msk [vmem:[#allocation3 + $0x4] sm:$0xf] %vm758_vm15, %v737_v44 }
  0xb5   : > { %809 = vst.msk [vmem:[#allocation3 + $0x4] sm:$0xf] %vm807_vm0, %v786_v7  ;;  %v639_v54 = vpop.permute.xlu1 %638 }
  0xb6   : > { %v945_v52 = vpop.permute.xlu0 %944  ;;  %661 = vst.msk [vmem:[#allocation3 + $0x8] sm:$0xf] %vm658_vm14, %v639_v54 }
  0xb7   : > { %969 = vst.msk [vmem:[#allocation3] sm:$0xf] %vm968_vm1, %v945_v52 }
  0xb8   : > { %761 = vst.msk [vmem:[#allocation3 + $0x8] sm:$0xf] %vm758_vm15, %v739_v9 }
  0xb9   : > { %1066 = vst.msk [vmem:[#allocation3] sm:$0xf] %vm1065_vm2, %v1042_v47  ;;  %v641_v53 = vpop.permute.xlu1 %640 }
  0xba   : > { %810 = vst.msk [vmem:[#allocation3 + $0x8] sm:$0xf] %vm807_vm0, %v788_v6  ;;  %v949_v55 = vpop.permute.xlu0 %948 }
  0xbb   : > { %662 = vst.msk [vmem:[#allocation3 + $0xc] sm:$0xf] %vm658_vm14, %v641_v53 }
  0xbc   : > { %971 = vst.msk [vmem:[#allocation3 + $0x8] sm:$0xf] %vm968_vm1, %v949_v55 }
  0xbd   : > { %762 = vst.msk [vmem:[#allocation3 + $0xc] sm:$0xf] %vm758_vm15, %v741_v46  ;;  %v947_v56 = vpop.permute.xlu1 %946 }
  0xbe   : > { %1068 = vst.msk [vmem:[#allocation3 + $0x8] sm:$0xf] %vm1065_vm2, %v1046_v49  ;;  %v1092_v57 = vpop.permute.xlu0 %1091 }
  0xbf   : > { %811 = vst.msk [vmem:[#allocation3 + $0xc] sm:$0xf] %vm807_vm0, %v790_v42 }
  0xc0   : > { %970 = vst.msk [vmem:[#allocation3 + $0x4] sm:$0xf] %vm968_vm1, %v947_v56 }
  0xc1   : > { %1116 = vst.msk [vmem:[#allocation3] sm:$0xf] %vm1115_vm3, %v1092_v57  ;;  %v951_v45 = vpop.permute.xlu1 %950 }
  0xc2   : > { %1067 = vst.msk [vmem:[#allocation3 + $0x4] sm:$0xf] %vm1065_vm2, %v1044_v48  ;;  %v1096_v58 = vpop.permute.xlu0 %1095 }
  0xc3   : > { %972 = vst.msk [vmem:[#allocation3 + $0xc] sm:$0xf] %vm968_vm1, %v951_v45 }
  0xc4   : > { %1118 = vst.msk [vmem:[#allocation3 + $0x8] sm:$0xf] %vm1115_vm3, %v1096_v58 }
  0xc5   : > { %1069 = vst.msk [vmem:[#allocation3 + $0xc] sm:$0xf] %vm1065_vm2, %v1048_v50  ;;  %v1094_v59 = vpop.permute.xlu1 %1093 }
  0xc6   : > { %v1253_v60 = vpop.permute.xlu0 %1252  ;;  %1117 = vst.msk [vmem:[#allocation3 + $0x4] sm:$0xf] %vm1115_vm3, %v1094_v59 }
  0xc7   : > { %1277 = vst.msk [vmem:[#allocation3] sm:$0xf] %vm1276_vm4, %v1253_v60 }
  0xc9   : > { %v1098_v61 = vpop.permute.xlu1 %1097 }
  0xca   : > { %v1257_v15 = vpop.permute.xlu0 %1256  ;;  %1119 = vst.msk [vmem:[#allocation3 + $0xc] sm:$0xf] %vm1115_vm3, %v1098_v61 }
  0xcb   : > { %1279 = vst.msk [vmem:[#allocation3 + $0x8] sm:$0xf] %vm1276_vm4, %v1257_v15 }
  0xcd   : > { %v1255_v62 = vpop.permute.xlu1 %1254 }
  0xce   : > { %v1350_v2 = vpop.permute.xlu0 %1349  ;;  %1278 = vst.msk [vmem:[#allocation3 + $0x4] sm:$0xf] %vm1276_vm4, %v1255_v62 }
  0xcf   : > { %1374 = vst.msk [vmem:[#allocation3] sm:$0xf] %vm1373_vm5, %v1350_v2 }
  0xd1   : > { %v1259_v3 = vpop.permute.xlu1 %1258 }
  0xd2   : > { %v643_v4 = vpop.permute.xlu0 %642  ;;  %1280 = vst.msk [vmem:[#allocation3 + $0xc] sm:$0xf] %vm1276_vm4, %v1259_v3 }
  0xd3   : > { %663 = vst.msk [vmem:[#allocation3 + $0x10] sm:$0xf] %vm658_vm14, %v643_v4 }
  0xd5   : > { %v1352_v5 = vpop.permute.xlu1 %1351 }
  0xd6   : > { %v1354_v8 = vpop.permute.xlu0 %1353  ;;  %1375 = vst.msk [vmem:[#allocation3 + $0x4] sm:$0xf] %vm1373_vm5, %v1352_v5 }
  0xd7   : > { %1376 = vst.msk [vmem:[#allocation3 + $0x8] sm:$0xf] %vm1373_vm5, %v1354_v8 }
  0xd9   : > { %v645_v63 = vpop.permute.xlu1 %644 }
  0xda   : > { %664 = vst.msk [vmem:[#allocation3 + $0x14] sm:$0xf] %vm658_vm14, %v645_v63 }
  0xdb   : > { %v647_v11 = vpop.permute.xlu0 %646 }
  0xdc   : > { %665 = vst.msk [vmem:[#allocation3 + $0x18] sm:$0xf] %vm658_vm14, %v647_v11 }
  0xdd   : > { %v1356_v0 = vpop.permute.xlu1 %1355  ;;  %v1807_v10 = vld [vmem:[#allocation3] sm:$0xff]  }
  0xde   : > { %1377 = vst.msk [vmem:[#allocation3 + $0xc] sm:$0xf] %vm1373_vm5, %v1356_v0  ;;  %1766 = vmatprep.mubr.msk.bf16.mxu0 %vm1446_vm6, %v1807_v10 }
  0xdf   : > { %v743_v13 = vpop.permute.xlu0 %742 }
  0xe0   : > { %763 = vst.msk [vmem:[#allocation3 + $0x10] sm:$0xf] %vm758_vm15, %v743_v13 }
  0xe1   : > { %v649_v12 = vpop.permute.xlu1 %648 }
  0xe2   : > { %666 = vst.msk [vmem:[#allocation3 + $0x1c] sm:$0xf] %vm658_vm14, %v649_v12 }
  0xe3   : > { %v747_v17 = vpop.permute.xlu0 %746 }
  0xe4   : > { %765 = vst.msk [vmem:[#allocation3 + $0x18] sm:$0xf] %vm758_vm15, %v747_v17 }
  0xe5   : > { %v745_v14 = vpop.permute.xlu1 %744  ;;  %v1809_v16 = vld [vmem:[#allocation3 + $0x8] sm:$0xff]  }
  0xe6   : > { %764 = vst.msk [vmem:[#allocation3 + $0x14] sm:$0xf] %vm758_vm15, %v745_v14  ;;  %1767 = vmatmul.mubr.msk.bf16.vlgmr.msra.gmra.mrb[0].mxu0 %vm1446_vm6, %v1809_v16 }
  0xe7   : > { %v792_v19 = vpop.permute.xlu0 %791 }
  0xe8   : > { %812 = vst.msk [vmem:[#allocation3 + $0x10] sm:$0xf] %vm807_vm0, %v792_v19 }
  0xe9   : > { %v749_v18 = vpop.permute.xlu1 %748 }
  0xea   : > { %766 = vst.msk [vmem:[#allocation3 + $0x1c] sm:$0xf] %vm758_vm15, %v749_v18 }
  0xeb   : > { %v796_v22 = vpop.permute.xlu0 %795 }
  0xec   : > { %814 = vst.msk [vmem:[#allocation3 + $0x18] sm:$0xf] %vm807_vm0, %v796_v22 }
  0xed   : > { %v794_v21 = vpop.permute.xlu1 %793 }
  0xee   : > { %813 = vst.msk [vmem:[#allocation3 + $0x14] sm:$0xf] %vm807_vm0, %v794_v21 }
  0xef   : > { %v953_v29 = vpop.permute.xlu0 %952 }
  0xf0   : > { %973 = vst.msk [vmem:[#allocation3 + $0x10] sm:$0xf] %vm968_vm1, %v953_v29 }
  0xf1   : > { %v798_v23 = vpop.permute.xlu1 %797 }
  0xf2   : > { %815 = vst.msk [vmem:[#allocation3 + $0x1c] sm:$0xf] %vm807_vm0, %v798_v23 }
  0xf3   : > { %v957_v20 = vpop.permute.xlu0 %956 }
  0xf4   : > { %975 = vst.msk [vmem:[#allocation3 + $0x18] sm:$0xf] %vm968_vm1, %v957_v20 }
  0xf5   : > { %v955_v25 = vpop.permute.xlu1 %954 }
  0xf6   : > { %974 = vst.msk [vmem:[#allocation3 + $0x14] sm:$0xf] %vm968_vm1, %v955_v25 }
  0xf7   : > { %v1050_v27 = vpop.permute.xlu0 %1049 }
  0xf8   : > { %1070 = vst.msk [vmem:[#allocation3 + $0x10] sm:$0xf] %vm1065_vm2, %v1050_v27 }
  0xf9   : > { %v959_v26 = vpop.permute.xlu1 %958 }
  0xfa   : > { %976 = vst.msk [vmem:[#allocation3 + $0x1c] sm:$0xf] %vm968_vm1, %v959_v26 }
  0xfb   : > { %v1054_v31 = vpop.permute.xlu0 %1053 }
  0xfc   : > { %1072 = vst.msk [vmem:[#allocation3 + $0x18] sm:$0xf] %vm1065_vm2, %v1054_v31 }
  0xfd   : > { %v1052_v28 = vpop.permute.xlu1 %1051 }
  0xfe   : > { %1071 = vst.msk [vmem:[#allocation3 + $0x14] sm:$0xf] %vm1065_vm2, %v1052_v28 }
  0xff   : > { %v1100_v33 = vpop.permute.xlu0 %1099 }
 0x100   : > { %1120 = vst.msk [vmem:[#allocation3 + $0x10] sm:$0xf] %vm1115_vm3, %v1100_v33 }
 0x101   : > { %v1056_v32 = vpop.permute.xlu1 %1055 }
 0x102   : > { %1073 = vst.msk [vmem:[#allocation3 + $0x1c] sm:$0xf] %vm1065_vm2, %v1056_v32 }
 0x103   : > { %v1104_v35 = vpop.permute.xlu0 %1103 }
 0x104   : > { %1122 = vst.msk [vmem:[#allocation3 + $0x18] sm:$0xf] %vm1115_vm3, %v1104_v35 }
 0x105   : > { %v1102_v34 = vpop.permute.xlu1 %1101 }
 0x106   : > { %1121 = vst.msk [vmem:[#allocation3 + $0x14] sm:$0xf] %vm1115_vm3, %v1102_v34 }
 0x107   : > { %v1261_v37 = vpop.permute.xlu0 %1260 }
 0x108   : > { %1281 = vst.msk [vmem:[#allocation3 + $0x10] sm:$0xf] %vm1276_vm4, %v1261_v37 }
 0x109   : > { %v1106_v36 = vpop.permute.xlu1 %1105 }
 0x10a   : > { %1123 = vst.msk [vmem:[#allocation3 + $0x1c] sm:$0xf] %vm1115_vm3, %v1106_v36 }
 0x10b   : > { %v1265_v38 = vpop.permute.xlu0 %1264 }
 0x10c   : > { %1283 = vst.msk [vmem:[#allocation3 + $0x18] sm:$0xf] %vm1276_vm4, %v1265_v38 }
 0x10d   : > { %v1263_v7 = vpop.permute.xlu1 %1262 }
 0x10e   : > { %1282 = vst.msk [vmem:[#allocation3 + $0x14] sm:$0xf] %vm1276_vm4, %v1263_v7 }
 0x10f   : > { %v1358_v40 = vpop.permute.xlu0 %1357 }
 0x110   : > { %1378 = vst.msk [vmem:[#allocation3 + $0x10] sm:$0xf] %vm1373_vm5, %v1358_v40 }
 0x111   : > { %v1267_v39 = vpop.permute.xlu1 %1266 }
 0x112   : > { %1284 = vst.msk [vmem:[#allocation3 + $0x1c] sm:$0xf] %vm1276_vm4, %v1267_v39 }
 0x113   : > { %v1362_v30 = vpop.permute.xlu0 %1361 }
 0x114   : > { %1380 = vst.msk [vmem:[#allocation3 + $0x18] sm:$0xf] %vm1373_vm5, %v1362_v30 }
 0x115   : > { %v1360_v24 = vpop.permute.xlu1 %1359 }
 0x116   : > { %1379 = vst.msk [vmem:[#allocation3 + $0x14] sm:$0xf] %vm1373_vm5, %v1360_v24 }
 0x119   : > { %v1364_v1 = vpop.permute.xlu1 %1363 }
 0x11a   : > { %1381 = vst.msk [vmem:[#allocation3 + $0x1c] sm:$0xf] %vm1373_vm5, %v1364_v1 }
 0x11d   : > { %v1810_v41 = vld [vmem:[#allocation3 + $0x10] sm:$0xff]  }
 0x11e   : > { %1770 = vmatprep.mubr.msk.bf16.mxu1 %vm1446_vm6, %v1810_v41 }
 0x121   : > { %v1811_v42 = vld [vmem:[#allocation3 + $0x18] sm:$0xff]  }
 0x122   : > { %1771 = vmatmul.mubr.msk.bf16.vlgmr.msra.gmra.mrb[0].mxu1 %vm1446_vm6, %v1811_v42 }
 0x1b9   : > { %v1768_v6 = vpop.f32.mrb[0].mxu0 }
 0x1ba   : > { %1586 = vst.msk [vmem:[%s2297_s22 + $0x10] sm:$0xff] %vm1528_vm7, %v1768_v6  ;;  %v1497_v43 = vpop.f32.mrb[1].mxu0  ;;  %v1552_v47 = vmul.f32 %v1768_v6, %v1768_v6  ;;  %v1532_v54 = vsel %vm1528_vm7, %v1768_v6, 0.0 }
 0x1bb   : > { %v1550_v44 = vmul.f32 %v1497_v43, %v1497_v43  ;;  %1584 = vst.msk [vmem:[%s2297_s22] sm:$0xff] %vm1528_vm7, %v1497_v43  ;;  %v1769_v9 = vpop.f32.mrb[2].mxu0  ;;  %v1529_v48 = vsel %vm1528_vm7, %v1497_v43, 0.0 }
 0x1bc   : > { %1587 = vst.msk [vmem:[%s2297_s22 + $0x18] sm:$0xff] %vm1528_vm7, %v1769_v9  ;;  %v1500_v46 = vpop.f32.mrb[3].mxu0  ;;  %v1553_v53 = vmul.f32 %v1769_v9, %v1769_v9  ;;  %v1561_v45 = vsel %vm1528_vm7, %v1552_v47, 0.0  ;;  %v1534_v58 = vsel %vm1528_vm7, %v1769_v9, 0.0 }
 0x1bd   : > { %v1530_v49 = vsel %vm1528_vm7, %v1500_v46, 0.0  ;;  %v1551_v50 = vmul.f32 %v1500_v46, %v1500_v46  ;;  %1585 = vst.msk [vmem:[%s2297_s22 + $0x8] sm:$0xff] %vm1528_vm7, %v1500_v46  ;;  %v1558_v52 = vsel %vm1528_vm7, %v1550_v44, 0.0 }
 0x1be   : > { %v1531_v51 = vadd.f32 %v1530_v49, %v1529_v48  ;;  %v1563_v61 = vsel %vm1528_vm7, %v1553_v53, 0.0 }
 0x1bf   : > { %v1559_v55 = vsel %vm1528_vm7, %v1551_v50, 0.0 }
 0x1c0   : > { %v1533_v56 = vadd.f32 %v1532_v54, %v1531_v51  ;;  %v1560_v57 = vadd.f32 %v1559_v55, %v1558_v52 }
 0x1c2   : > { %v1562_v59 = vadd.f32 %v1561_v45, %v1560_v57  ;;  %v1535_v60 = vadd.f32 %v1534_v58, %v1533_v56 }
 0x1c4   : > { %v1564_v15 = vadd.f32 %v1563_v61, %v1562_v59 }
 0x1f5   : > { %v1772_v62 = vpop.f32.mrb[0].mxu1 }
 0x1f6   : > { %1590 = vst.msk [vmem:[%s2297_s22 + $0x30] sm:$0xff] %vm1528_vm7, %v1772_v62  ;;  %v1513_v2 = vpop.f32.mrb[1].mxu1  ;;  %v1556_v0 = vmul.f32 %v1772_v62, %v1772_v62  ;;  %v1540_v16 = vsel %vm1528_vm7, %v1772_v62, 0.0 }
 0x1f7   : > { %v1536_v3 = vsel %vm1528_vm7, %v1513_v2, 0.0  ;;  %v1554_v4 = vmul.f32 %v1513_v2, %v1513_v2  ;;  %1588 = vst.msk [vmem:[%s2297_s22 + $0x20] sm:$0xff] %vm1528_vm7, %v1513_v2  ;;  %v1773_v5 = vpop.f32.mrb[2].mxu1 }
 0x1f8   : > { %v1537_v8 = vadd.f32 %v1536_v3, %v1535_v60  ;;  %1591 = vst.msk [vmem:[%s2297_s22 + $0x38] sm:$0xff] %vm1528_vm7, %v1773_v5  ;;  %v1516_v63 = vpop.f32.mrb[3].mxu1  ;;  %v1557_v17 = vmul.f32 %v1773_v5, %v1773_v5  ;;  %v1569_v22 = vsel %vm1528_vm7, %v1556_v0, 0.0  ;;  %v1542_v23 = vsel %vm1528_vm7, %v1773_v5, 0.0 }
 0x1f9   : > { %v1565_v10 = vsel %vm1528_vm7, %v1554_v4, 0.0  ;;  %v1538_v11 = vsel %vm1528_vm7, %v1516_v63, 0.0  ;;  %v1555_v12 = vmul.f32 %v1516_v63, %v1516_v63  ;;  %1589 = vst.msk [vmem:[%s2297_s22 + $0x28] sm:$0xff] %vm1528_vm7, %v1516_v63 }
 0x1fa   : > { %v1566_v13 = vadd.f32 %v1565_v10, %v1564_v15  ;;  %v1539_v14 = vadd.f32 %v1538_v11, %v1537_v8  ;;  %v1571_v20 = vsel %vm1528_vm7, %v1557_v17, 0.0 }
 0x1fb   : > { %v1567_v18 = vsel %vm1528_vm7, %v1555_v12, 0.0 }
 0x1fc   : > { %v1541_v19 = vadd.f32 %v1540_v16, %v1539_v14  ;;  %v1568_v21 = vadd.f32 %v1567_v18, %v1566_v13 }
 0x1fe   : > { %v1543_v29 = vadd.f32 %v1542_v23, %v1541_v19  ;;  %v1570_v25 = vadd.f32 %v1569_v22, %v1568_v21 }
 0x200   : > { %v1544_v26 = vrot.slane %v1543_v29, 4  ;;  %v1572_v27 = vadd.f32 %v1571_v20, %v1570_v25 }
 0x202   : > { %v1545_v28 = vadd.f32 %v1544_v26, %v1543_v29  ;;  %v1573_v31 = vrot.slane %v1572_v27, 4 }
 0x204   : > { %v1546_v32 = vrot.slane %v1545_v28, 2  ;;  %v1574_v33 = vadd.f32 %v1573_v31, %v1572_v27 }
 0x206   : > { %v1547_v34 = vadd.f32 %v1546_v32, %v1545_v28  ;;  %v1575_v35 = vrot.slane %v1574_v33, 2 }
 0x208   : > { %v1548_v36 = vrot.slane %v1547_v34, 1  ;;  %v1576_v37 = vadd.f32 %v1575_v35, %v1574_v33 }
 0x20a   : > { %v1577_v7 = vrot.slane %v1576_v37, 1  ;;  %v1549_v38 = vadd.f32 %v1548_v36, %v1547_v34 }
 0x20c   : > { %v1578_v39 = vadd.f32 %v1577_v7, %v1576_v37 }
 0x20e   : > { %v1580_v40 = vsel %vm1579_vm8, %v1549_v38, %v1578_v39 }
 0x20f   : > { %v1582_v24 = vsel %vm1581_vm9, %v1580_v40, 0.0 }
 0x210   : > { %1583 = vst.msk [vmem:[%s208_s25] sm:$0xff] %vm1528_vm7, %v1582_v24 }
 0x211 PF: > { %s15_s15 = sadd.s32 1, %s1818_s15  }
 0x212   : > { %p12_p4 = scmp.ge.s32.totalorder %s15_s15, 4  }
 0x214   :  { %14 = sbr.rel (!%p12_p4) target bundleno = 1 (0x1), region = 77 }

</bundles_post_ra>
